<compile_context>
chip_gen: v7x
topology: tpu7x:2x2x1
jax: 0.10.0
libtpu: 0.0.40
codegen_flags: <defaults>
</compile_context>

<pallas_src>
import functools

import jax
import jax.numpy as jnp
from jax.experimental import pallas as pl
from jax.experimental.pallas import tpu as pltpu

_EPS = 1e-5


def _recurrent_kernel(x_ref, acat_ref, sdn_ref, sup_ref, g_ref,
                      gamma_ref, beta_ref, o_ref, *, t, wc):
    """Fused (t+1) x [Conv3x3 -> BatchNorm (batch stats) -> ReLU].

    Layout: activations are (M, WC) = (N*H, W*C) lane-dense slabs.
      acat_ref : (WC, 3*WC) concatenated block-banded conv matrices, one WC
                 block per ky tap (W-direction padding folded in as zero bands).
      sdn/sup  : (M, M) row-shift+mask matrices implementing the ky shift and
                 the H-direction zero padding.
      g_ref    : (WC, WC) per-channel broadcast matrix pre-scaled by
                 1/(N*H*W):  G[i,j] = (i%C == j%C) / count.
    """
    x = x_ref[...]
    acat = acat_ref[...]
    sdn = sdn_ref[...]
    sup = sup_ref[...]
    g = g_ref[...]
    gamma = gamma_ref[...]
    beta = beta_ref[...]

    def conv_bn_relu(v):
        # 3x3 conv: one banded matmul produces all three ky-tap partials;
        # lane slices below are 128-aligned (tile-aligned, effectively free).
        p = jnp.dot(v, acat, preferred_element_type=jnp.float32)
        p0 = p[:, :wc]
        p1 = p[:, wc:2 * wc]
        p2 = p[:, 2 * wc:]
        y = (p1
             + jnp.dot(sdn, p0, preferred_element_type=jnp.float32)
             + jnp.dot(sup, p2, preferred_element_type=jnp.float32))
        # Conv bias intentionally omitted: it cancels exactly under
        # batch-statistics BatchNorm (mean shift, variance invariant).
        # BatchNorm2d training-mode forward (biased variance) + ReLU.
        # Row-sums (XLU) feed a tiny (1,WC)@(WC,WC) channel broadcast matmul;
        # the two reductions are independent (one-pass statistics).
        sy = jnp.sum(y, axis=0, keepdims=True)
        syy = jnp.sum(y * y, axis=0, keepdims=True)
        mean = jnp.dot(sy, g, preferred_element_type=jnp.float32)
        ey2 = jnp.dot(syy, g, preferred_element_type=jnp.float32)
        var = ey2 - mean * mean
        scale = gamma * jax.lax.rsqrt(var + _EPS)     # (1, WC), EUP rsqrt
        shift = beta - mean * scale                    # (1, WC)
        return jnp.maximum(y * scale + shift, 0.0)

    x1 = conv_bn_relu(x)            # i == 0: x1 = conv(x)
    for _ in range(t):              # each iteration: x1 = conv(x + x1)
        x1 = conv_bn_relu(x + x1)
    o_ref[...] = x1


def _build_band_matrices(w_hwio, w_sp):
    """(3,3,Cin,Cout) conv weight -> (3, W*Cin, W*Cout) block-banded matrices.

    A[ky][wi*Cin + ci, wo*Cout + co] = w_hwio[ky, kx, ci, co] with
    kx = wi - wo + 1; entries outside the band are zero, which implements
    padding=1 along W.
    """
    _, _, cin, cout = w_hwio.shape
    mats = []
    for ky in range(3):
        a = jnp.zeros((w_sp * cin, w_sp * cout), jnp.float32)
        for kx in range(3):
            sel = jnp.eye(w_sp, w_sp, k=1 - kx, dtype=jnp.float32)
            a = a + jnp.kron(sel, w_hwio[ky, kx].astype(jnp.float32))
        mats.append(a)
    return jnp.stack(mats, axis=0)


def _build_row_shift_matrices(n, h):
    """(M, M) matrices shifting per-ky conv contributions by one image row
    and zeroing them at the H boundary (padding=1 along H)."""
    m = n * h
    r = jnp.arange(m)
    hh = r % h
    s_down = ((r[:, None] - 1 == r[None, :]) &
              (hh[:, None] != 0)).astype(jnp.float32)
    s_up = ((r[:, None] + 1 == r[None, :]) &
            (hh[:, None] != h - 1)).astype(jnp.float32)
    return s_down, s_up


def _build_channel_broadcast_matrix(w_sp, c):
    """G[i, j] = 1 iff lanes i and j hold the same channel (i % C == j % C)."""
    lane = jnp.arange(w_sp * c)
    return (lane[:, None] % c == lane[None, :] % c).astype(jnp.float32)


def recurrent_block(x_nchw, params, t=2):
    """Matches Recurrent_block.forward. Input/output are NCHW like PyTorch."""
    w_hwio, bias, gamma, beta = params
    del bias  # Cancels exactly under batch-statistics BatchNorm (see kernel).
    n, c, h, w = x_nchw.shape
    m, wc = n * h, w * c

    # NCHW -> NHWC -> lane-dense (N*H, W*C) slab (W*C = 128 for the test case,
    # giving unmasked full-lane loads/stores inside the kernel).
    x_slab = jnp.transpose(x_nchw, (0, 2, 3, 1)).astype(jnp.float32)
    x_slab = x_slab.reshape(m, wc)

    a = _build_band_matrices(w_hwio, w)                          # (3, WC, WC)
    a_cat = jnp.concatenate([a[0], a[1], a[2]], axis=1)          # (WC, 3*WC)
    s_down, s_up = _build_row_shift_matrices(n, h)               # (M, M) each
    g = _build_channel_broadcast_matrix(w, c) / float(n * h * w)  # (WC, WC)
    gamma_b = jnp.tile(gamma.reshape(1, c), (1, w))              # (1, WC)
    beta_b = jnp.tile(beta.reshape(1, c), (1, w))                # (1, WC)

    kernel = functools.partial(_recurrent_kernel, t=t, wc=wc)
    vmem = lambda: pl.BlockSpec(memory_space=pltpu.MemorySpace.VMEM)
    out_slab = pl.pallas_call(
        kernel,
        out_shape=jax.ShapeDtypeStruct((m, wc), jnp.float32),
        in_specs=[vmem() for _ in range(7)],
        out_specs=vmem(),
    )(x_slab, a_cat, s_down, s_up, g, gamma_b, beta_b)

    out = out_slab.reshape(n, h, w, c)
    return jnp.transpose(out, (0, 3, 1, 2))                      # NHWC -> NCHW


def _reference(x_nchw, params, t=2):
    """Pure-JAX/XLA reference of the same forward pass (validation only)."""
    w_hwio, bias, gamma, beta = params
    x = jnp.transpose(x_nchw, (0, 2, 3, 1)).astype(jnp.float32)

    def conv_bn_relu(v):
        y = jax.lax.conv_general_dilated(
            v, w_hwio, window_strides=(1, 1), padding=((1, 1), (1, 1)),
            dimension_numbers=("NHWC", "HWIO", "NHWC"))
        y = y + bias.reshape(1, 1, 1, -1)
        mean = jnp.mean(y, axis=(0, 1, 2), keepdims=True)
        var = jnp.mean((y - mean) ** 2, axis=(0, 1, 2), keepdims=True)
        yn = (y - mean) * jax.lax.rsqrt(var + _EPS)
        return jnp.maximum(gamma.reshape(1, 1, 1, -1) * yn
                           + beta.reshape(1, 1, 1, -1), 0.0)

    x1 = conv_bn_relu(x)
    for _ in range(t):
        x1 = conv_bn_relu(x + x1)
    return jnp.transpose(x1, (0, 3, 1, 2))


def init_params(key, ch_out):
    """Deterministic synthetic parameters (PyTorch-default-like init).
    Conv weight stored in HWIO: w[ky, kx, ci, co]."""
    kw, kb = jax.random.split(key)
    fan_in = ch_out * 3 * 3
    bound = 1.0 / (fan_in ** 0.5)
    w = jax.random.uniform(kw, (3, 3, ch_out, ch_out), jnp.float32, -bound, bound)
    b = jax.random.uniform(kb, (ch_out,), jnp.float32, -bound, bound)
    gamma = jnp.ones((ch_out,), jnp.float32)   # BatchNorm2d.weight init
    beta = jnp.zeros((ch_out,), jnp.float32)   # BatchNorm2d.bias init
    return w, b, gamma, beta


if __name__ == "__main__":
    key = jax.random.PRNGKey(0)
    kx, kp = jax.random.split(key)

    N, C, H, W = 2, 8, 16, 16          # ch_out = 8, t = 2; W*C = 128 (lane-dense)
    x = jax.random.normal(kx, (N, C, H, W), jnp.float32)
    params = init_params(kp, C)

    out = recurrent_block(x, params, t=2)
    jax.block_until_ready(out)

    assert out.shape == (N, C, H, W)
    assert bool(jnp.all(jnp.isfinite(out)))
    assert bool(jnp.all(out >= 0.0))   # ReLU output

    ref = _reference(x, params, t=2)
    max_err = float(jnp.max(jnp.abs(out - ref)))
    assert bool(jnp.allclose(out, ref, atol=2e-3, rtol=2e-3)), max_err

    print("KERNEL_OK")
</pallas_src>

<mosaic_0001>
module attributes {stable_mosaic.version = 11 : i64} {
  func.func @_recurrent_kernel(%arg0: memref<32x128xf32, #tpu.memory_space<vmem>>, %arg1: memref<128x384xf32, #tpu.memory_space<vmem>>, %arg2: memref<32x32xf32, #tpu.memory_space<vmem>>, %arg3: memref<32x32xf32, #tpu.memory_space<vmem>>, %arg4: memref<128x128xf32, #tpu.memory_space<vmem>>, %arg5: memref<1x128xf32, #tpu.memory_space<vmem>>, %arg6: memref<1x128xf32, #tpu.memory_space<vmem>>, %arg7: memref<32x128xf32, #tpu.memory_space<vmem>>) attributes {dimension_semantics = [], scalar_prefetch = 0 : i64, scratch_operands = 0 : i64, tpu.core_type = #tpu.core_type<tc>} {
    %c0 = arith.constant 0 : index
    %c0_0 = arith.constant 0 : index
    %0 = vector.load %arg0[%c0, %c0_0] : memref<32x128xf32, #tpu.memory_space<vmem>>, vector<32x128xf32>
    %c0_1 = arith.constant 0 : index
    %c0_2 = arith.constant 0 : index
    %1 = vector.load %arg1[%c0_1, %c0_2] : memref<128x384xf32, #tpu.memory_space<vmem>>, vector<128x384xf32>
    %c0_3 = arith.constant 0 : index
    %c0_4 = arith.constant 0 : index
    %2 = vector.load %arg2[%c0_3, %c0_4] : memref<32x32xf32, #tpu.memory_space<vmem>>, vector<32x32xf32>
    %c0_5 = arith.constant 0 : index
    %c0_6 = arith.constant 0 : index
    %3 = vector.load %arg3[%c0_5, %c0_6] : memref<32x32xf32, #tpu.memory_space<vmem>>, vector<32x32xf32>
    %c0_7 = arith.constant 0 : index
    %c0_8 = arith.constant 0 : index
    %4 = vector.load %arg4[%c0_7, %c0_8] : memref<128x128xf32, #tpu.memory_space<vmem>>, vector<128x128xf32>
    %c0_9 = arith.constant 0 : index
    %c0_10 = arith.constant 0 : index
    %5 = vector.load %arg5[%c0_9, %c0_10] : memref<1x128xf32, #tpu.memory_space<vmem>>, vector<1x128xf32>
    %c0_11 = arith.constant 0 : index
    %c0_12 = arith.constant 0 : index
    %6 = vector.load %arg6[%c0_11, %c0_12] : memref<1x128xf32, #tpu.memory_space<vmem>>, vector<1x128xf32>
    %cst = arith.constant dense<0.000000e+00> : vector<32x384xf32>
    %7 = tpu.matmul %0, %1, %cst {dimension_numbers = #tpu.dot_dimension_numbers<[1], [0], [0], [1], [0, 0, 1, 1], [], []>} : vector<32x128xf32>, vector<128x384xf32>, vector<32x384xf32> -> vector<32x384xf32>
    %8 = vector.extract_strided_slice %7 {offsets = [0, 0], sizes = [32, 128], strides = [1, 1]} : vector<32x384xf32> to vector<32x128xf32>
    %9 = vector.extract_strided_slice %7 {offsets = [0, 128], sizes = [32, 128], strides = [1, 1]} : vector<32x384xf32> to vector<32x128xf32>
    %10 = vector.extract_strided_slice %7 {offsets = [0, 256], sizes = [32, 128], strides = [1, 1]} : vector<32x384xf32> to vector<32x128xf32>
    %cst_13 = arith.constant dense<0.000000e+00> : vector<32x128xf32>
    %11 = tpu.matmul %2, %8, %cst_13 {dimension_numbers = #tpu.dot_dimension_numbers<[1], [0], [0], [1], [0, 0, 1, 1], [], []>} : vector<32x32xf32>, vector<32x128xf32>, vector<32x128xf32> -> vector<32x128xf32>
    %12 = arith.addf %9, %11 : vector<32x128xf32>
    %cst_14 = arith.constant dense<0.000000e+00> : vector<32x128xf32>
    %13 = tpu.matmul %3, %10, %cst_14 {dimension_numbers = #tpu.dot_dimension_numbers<[1], [0], [0], [1], [0, 0, 1, 1], [], []>} : vector<32x32xf32>, vector<32x128xf32>, vector<32x128xf32> -> vector<32x128xf32>
    %14 = arith.addf %12, %13 : vector<32x128xf32>
    %cst_15 = arith.constant dense<0.000000e+00> : vector<128xf32>
    %15 = vector.multi_reduction <add>, %14, %cst_15 [0] : vector<32x128xf32> to vector<128xf32>
    %16 = vector.shape_cast %15 : vector<128xf32> to vector<1x128xf32>
    %17 = arith.mulf %14, %14 : vector<32x128xf32>
    %cst_16 = arith.constant dense<0.000000e+00> : vector<128xf32>
    %18 = vector.multi_reduction <add>, %17, %cst_16 [0] : vector<32x128xf32> to vector<128xf32>
    %19 = vector.shape_cast %18 : vector<128xf32> to vector<1x128xf32>
    %cst_17 = arith.constant dense<0.000000e+00> : vector<1x128xf32>
    %20 = tpu.matmul %16, %4, %cst_17 {dimension_numbers = #tpu.dot_dimension_numbers<[1], [0], [0], [1], [0, 0, 1, 1], [], []>} : vector<1x128xf32>, vector<128x128xf32>, vector<1x128xf32> -> vector<1x128xf32>
    %cst_18 = arith.constant dense<0.000000e+00> : vector<1x128xf32>
    %21 = tpu.matmul %19, %4, %cst_18 {dimension_numbers = #tpu.dot_dimension_numbers<[1], [0], [0], [1], [0, 0, 1, 1], [], []>} : vector<1x128xf32>, vector<128x128xf32>, vector<1x128xf32> -> vector<1x128xf32>
    %22 = arith.mulf %20, %20 : vector<1x128xf32>
    %23 = arith.subf %21, %22 : vector<1x128xf32>
    %cst_19 = arith.constant 9.99999974E-6 : f32
    %24 = vector.broadcast %cst_19 : f32 to vector<1x128xf32>
    %25 = arith.addf %23, %24 : vector<1x128xf32>
    %26 = math.rsqrt %25 : vector<1x128xf32>
    %27 = arith.mulf %5, %26 : vector<1x128xf32>
    %28 = arith.mulf %20, %27 : vector<1x128xf32>
    %29 = arith.subf %6, %28 : vector<1x128xf32>
    %30 = vector.broadcast %27 : vector<1x128xf32> to vector<32x128xf32>
    %31 = arith.mulf %14, %30 : vector<32x128xf32>
    %32 = vector.broadcast %29 : vector<1x128xf32> to vector<32x128xf32>
    %33 = arith.addf %31, %32 : vector<32x128xf32>
    %cst_20 = arith.constant 0.000000e+00 : f32
    %34 = vector.broadcast %cst_20 : f32 to vector<32x128xf32>
    %35 = arith.maximumf %33, %34 : vector<32x128xf32>
    %36 = arith.addf %0, %35 : vector<32x128xf32>
    %cst_21 = arith.constant dense<0.000000e+00> : vector<32x384xf32>
    %37 = tpu.matmul %36, %1, %cst_21 {dimension_numbers = #tpu.dot_dimension_numbers<[1], [0], [0], [1], [0, 0, 1, 1], [], []>} : vector<32x128xf32>, vector<128x384xf32>, vector<32x384xf32> -> vector<32x384xf32>
    %38 = vector.extract_strided_slice %37 {offsets = [0, 0], sizes = [32, 128], strides = [1, 1]} : vector<32x384xf32> to vector<32x128xf32>
    %39 = vector.extract_strided_slice %37 {offsets = [0, 128], sizes = [32, 128], strides = [1, 1]} : vector<32x384xf32> to vector<32x128xf32>
    %40 = vector.extract_strided_slice %37 {offsets = [0, 256], sizes = [32, 128], strides = [1, 1]} : vector<32x384xf32> to vector<32x128xf32>
    %cst_22 = arith.constant dense<0.000000e+00> : vector<32x128xf32>
    %41 = tpu.matmul %2, %38, %cst_22 {dimension_numbers = #tpu.dot_dimension_numbers<[1], [0], [0], [1], [0, 0, 1, 1], [], []>} : vector<32x32xf32>, vector<32x128xf32>, vector<32x128xf32> -> vector<32x128xf32>
    %42 = arith.addf %39, %41 : vector<32x128xf32>
    %cst_23 = arith.constant dense<0.000000e+00> : vector<32x128xf32>
    %43 = tpu.matmul %3, %40, %cst_23 {dimension_numbers = #tpu.dot_dimension_numbers<[1], [0], [0], [1], [0, 0, 1, 1], [], []>} : vector<32x32xf32>, vector<32x128xf32>, vector<32x128xf32> -> vector<32x128xf32>
    %44 = arith.addf %42, %43 : vector<32x128xf32>
    %cst_24 = arith.constant dense<0.000000e+00> : vector<128xf32>
    %45 = vector.multi_reduction <add>, %44, %cst_24 [0] : vector<32x128xf32> to vector<128xf32>
    %46 = vector.shape_cast %45 : vector<128xf32> to vector<1x128xf32>
    %47 = arith.mulf %44, %44 : vector<32x128xf32>
    %cst_25 = arith.constant dense<0.000000e+00> : vector<128xf32>
    %48 = vector.multi_reduction <add>, %47, %cst_25 [0] : vector<32x128xf32> to vector<128xf32>
    %49 = vector.shape_cast %48 : vector<128xf32> to vector<1x128xf32>
    %cst_26 = arith.constant dense<0.000000e+00> : vector<1x128xf32>
    %50 = tpu.matmul %46, %4, %cst_26 {dimension_numbers = #tpu.dot_dimension_numbers<[1], [0], [0], [1], [0, 0, 1, 1], [], []>} : vector<1x128xf32>, vector<128x128xf32>, vector<1x128xf32> -> vector<1x128xf32>
    %cst_27 = arith.constant dense<0.000000e+00> : vector<1x128xf32>
    %51 = tpu.matmul %49, %4, %cst_27 {dimension_numbers = #tpu.dot_dimension_numbers<[1], [0], [0], [1], [0, 0, 1, 1], [], []>} : vector<1x128xf32>, vector<128x128xf32>, vector<1x128xf32> -> vector<1x128xf32>
    %52 = arith.mulf %50, %50 : vector<1x128xf32>
    %53 = arith.subf %51, %52 : vector<1x128xf32>
    %cst_28 = arith.constant 9.99999974E-6 : f32
    %54 = vector.broadcast %cst_28 : f32 to vector<1x128xf32>
    %55 = arith.addf %53, %54 : vector<1x128xf32>
    %56 = math.rsqrt %55 : vector<1x128xf32>
    %57 = arith.mulf %5, %56 : vector<1x128xf32>
    %58 = arith.mulf %50, %57 : vector<1x128xf32>
    %59 = arith.subf %6, %58 : vector<1x128xf32>
    %60 = vector.broadcast %57 : vector<1x128xf32> to vector<32x128xf32>
    %61 = arith.mulf %44, %60 : vector<32x128xf32>
    %62 = vector.broadcast %59 : vector<1x128xf32> to vector<32x128xf32>
    %63 = arith.addf %61, %62 : vector<32x128xf32>
    %cst_29 = arith.constant 0.000000e+00 : f32
    %64 = vector.broadcast %cst_29 : f32 to vector<32x128xf32>
    %65 = arith.maximumf %63, %64 : vector<32x128xf32>
    %66 = arith.addf %0, %65 : vector<32x128xf32>
    %cst_30 = arith.constant dense<0.000000e+00> : vector<32x384xf32>
    %67 = tpu.matmul %66, %1, %cst_30 {dimension_numbers = #tpu.dot_dimension_numbers<[1], [0], [0], [1], [0, 0, 1, 1], [], []>} : vector<32x128xf32>, vector<128x384xf32>, vector<32x384xf32> -> vector<32x384xf32>
    %68 = vector.extract_strided_slice %67 {offsets = [0, 0], sizes = [32, 128], strides = [1, 1]} : vector<32x384xf32> to vector<32x128xf32>
    %69 = vector.extract_strided_slice %67 {offsets = [0, 128], sizes = [32, 128], strides = [1, 1]} : vector<32x384xf32> to vector<32x128xf32>
    %70 = vector.extract_strided_slice %67 {offsets = [0, 256], sizes = [32, 128], strides = [1, 1]} : vector<32x384xf32> to vector<32x128xf32>
    %cst_31 = arith.constant dense<0.000000e+00> : vector<32x128xf32>
    %71 = tpu.matmul %2, %68, %cst_31 {dimension_numbers = #tpu.dot_dimension_numbers<[1], [0], [0], [1], [0, 0, 1, 1], [], []>} : vector<32x32xf32>, vector<32x128xf32>, vector<32x128xf32> -> vector<32x128xf32>
    %72 = arith.addf %69, %71 : vector<32x128xf32>
    %cst_32 = arith.constant dense<0.000000e+00> : vector<32x128xf32>
    %73 = tpu.matmul %3, %70, %cst_32 {dimension_numbers = #tpu.dot_dimension_numbers<[1], [0], [0], [1], [0, 0, 1, 1], [], []>} : vector<32x32xf32>, vector<32x128xf32>, vector<32x128xf32> -> vector<32x128xf32>
    %74 = arith.addf %72, %73 : vector<32x128xf32>
    %cst_33 = arith.constant dense<0.000000e+00> : vector<128xf32>
    %75 = vector.multi_reduction <add>, %74, %cst_33 [0] : vector<32x128xf32> to vector<128xf32>
    %76 = vector.shape_cast %75 : vector<128xf32> to vector<1x128xf32>
    %77 = arith.mulf %74, %74 : vector<32x128xf32>
    %cst_34 = arith.constant dense<0.000000e+00> : vector<128xf32>
    %78 = vector.multi_reduction <add>, %77, %cst_34 [0] : vector<32x128xf32> to vector<128xf32>
    %79 = vector.shape_cast %78 : vector<128xf32> to vector<1x128xf32>
    %cst_35 = arith.constant dense<0.000000e+00> : vector<1x128xf32>
    %80 = tpu.matmul %76, %4, %cst_35 {dimension_numbers = #tpu.dot_dimension_numbers<[1], [0], [0], [1], [0, 0, 1, 1], [], []>} : vector<1x128xf32>, vector<128x128xf32>, vector<1x128xf32> -> vector<1x128xf32>
    %cst_36 = arith.constant dense<0.000000e+00> : vector<1x128xf32>
    %81 = tpu.matmul %79, %4, %cst_36 {dimension_numbers = #tpu.dot_dimension_numbers<[1], [0], [0], [1], [0, 0, 1, 1], [], []>} : vector<1x128xf32>, vector<128x128xf32>, vector<1x128xf32> -> vector<1x128xf32>
    %82 = arith.mulf %80, %80 : vector<1x128xf32>
    %83 = arith.subf %81, %82 : vector<1x128xf32>
    %cst_37 = arith.constant 9.99999974E-6 : f32
    %84 = vector.broadcast %cst_37 : f32 to vector<1x128xf32>
    %85 = arith.addf %83, %84 : vector<1x128xf32>
    %86 = math.rsqrt %85 : vector<1x128xf32>
    %87 = arith.mulf %5, %86 : vector<1x128xf32>
    %88 = arith.mulf %80, %87 : vector<1x128xf32>
    %89 = arith.subf %6, %88 : vector<1x128xf32>
    %90 = vector.broadcast %87 : vector<1x128xf32> to vector<32x128xf32>
    %91 = arith.mulf %74, %90 : vector<32x128xf32>
    %92 = vector.broadcast %89 : vector<1x128xf32> to vector<32x128xf32>
    %93 = arith.addf %91, %92 : vector<32x128xf32>
    %cst_38 = arith.constant 0.000000e+00 : f32
    %94 = vector.broadcast %cst_38 : f32 to vector<32x128xf32>
    %95 = arith.maximumf %93, %94 : vector<32x128xf32>
    %c0_39 = arith.constant 0 : index
    %c0_40 = arith.constant 0 : index
    %96 = vector.load %arg7[%c0_39, %c0_40] : memref<32x128xf32, #tpu.memory_space<vmem>>, vector<32x128xf32>
    tpu.vector_store %arg7[%c0_39, %c0_40], %95 {strides = array<i32>} : memref<32x128xf32, #tpu.memory_space<vmem>>, vector<32x128xf32>,
    return
  }
}

</mosaic_0001>

<bundles_post_ra>
// kernel: tpu_custom_call.1
= control target key start
LH: loop header
LB: loop body
LE: loop exit
PB: predicated region body
PF: predicated region fallthrough
CT: control target
= control target key end

     0   :  { %12 = vsyncpa [#allocation3], 0  ;;  %s3656_s0 = inlined_call_operand.hbm [shape: f32[32,128], index: 0, kind: input, shape index: {}]   ;;  %s3657_s1 = inlined_call_operand.hbm [shape: f32[128,384], index: 1, kind: input, shape index: {}]   ;;  %s3658_s2 = inlined_call_operand.hbm [shape: f32[32,32], index: 2, kind: input, shape index: {}]   ;;  %s3659_s3 = inlined_call_operand.hbm [shape: f32[32,32], index: 3, kind: input, shape index: {}]   ;;  %s3660_s4 = inlined_call_operand.hbm [shape: f32[128,128], index: 4, kind: input, shape index: {}]   ;;  %s3661_s5 = inlined_call_operand.vmem [shape: f32[1,128], index: 5, kind: input, shape index: {}]   ;;  %s3662_s6 = inlined_call_operand.vmem [shape: f32[1,128], index: 6, kind: input, shape index: {}]   ;;  %s3663_s7 = inlined_call_operand.hbm [shape: f32[32,128], index: 7, kind: output, shape index: {}]  }
   0x1   :  { %13 = vsyncpa [#allocation6], 0 }
   0x2   :  { %14 = vsyncpa [#allocation9], 0 }
   0x3   :  { %15 = vsyncpa [#allocation4], 0  ;;  %s3049_s24 = smov [#allocation5]   ;;  %s2909_s28 = scalar_lea.hbm %s3657_s1, 6144 }
   0x4   :  { %s33_s25 = sshll.u32 %s3049_s24, 4  ;;  %p2910_p0 = scmp.ne.s32.totalorder %s3657_s1, %s2909_s28  ;;  %s34_s25 = int_to_ptr.vmem [resolvable:$true] %s33_s25 }
   0x5   :  { %p2913_p1 = scmp.lt.u32.totalorder %s2909_s28, %s3657_s1 }
   0x7   :  { %p2915_p2 = pnand %p2913_p1, %p2910_p0 }
   0x9   :  { %2918 = shalt.err (!%p2915_p2)
}
   0xa   :  { %s2919_s10 = scalar_lea.vmem %s34_s25, 6144  ;;  %p2924_p4 = scmp.lt.s32.totalorder %s34_s25, %s34_s25 }
   0xb   :  { %p2920_p3 = scmp.ne.s32.totalorder %s34_s25, %s2919_s10  ;;  %p2925_p5 = scmp.lt.s32.totalorder %s2919_s10, %s2919_s10 }
   0xd   :  { %p2926_p6 = por %p2925_p5, %p2924_p4 }
   0xf   :  { %p2927_p7 = pnand %p2926_p6, %p2920_p3 }
  0x11   :  { %2930 = shalt.err (!%p2927_p7)
}
  0x12   :  { %s3050_s11 = smov 384   ;;  %s3051_s12 = smov 24  }
  0x13   :  { %39 = dma.hbm_to_vmem [thread:$0]  %s3657_s1, 6144, %s34_s25, [#allocation6], %s3050_s11, %s3050_s11, %s3051_s12  }
  0x14   :  { %s3052_s15 = smov [#allocation8]   ;;  %s3053_s17 = smov [#allocation2]  }
  0x15   :  { %s57_s16 = sshll.u32 %s3052_s15, 4  ;;  %s21_s18 = sshll.u32 %s3053_s17, 4  ;;  %s58_s16 = int_to_ptr.vmem [resolvable:$true] %s57_s16  ;;  %s22_s18 = int_to_ptr.vmem [resolvable:$true] %s21_s18 }
  0x16   :  { %s2931_s21 = scalar_lea.hbm %s3659_s3, 512 }
  0x17   :  { %p2932_p8 = scmp.ne.s32.totalorder %s3659_s3, %s2931_s21  ;;  %p2935_p9 = scmp.lt.u32.totalorder %s2931_s21, %s3659_s3 }
  0x19   :  { %p2937_p10 = pnand %p2935_p9, %p2932_p8 }
  0x1b   :  { %2940 = shalt.err (!%p2937_p10)
}
  0x1c   :  { %s2941_s1 = scalar_lea.vmem %s58_s16, 512  ;;  %p2946_p12 = scmp.lt.s32.totalorder %s58_s16, %s58_s16 }
  0x1d   :  { %p2942_p11 = scmp.ne.s32.totalorder %s58_s16, %s2941_s1  ;;  %p2947_p13 = scmp.lt.s32.totalorder %s2941_s1, %s2941_s1 }
  0x1f   :  { %p2948_p0 = por %p2947_p13, %p2946_p12 }
  0x21   :  { %p2949_p1 = pnand %p2948_p0, %p2942_p11 }
  0x23   :  { %2952 = shalt.err (!%p2949_p1)
}
  0x24   :  { %s3054_s25 = smov 128   ;;  %s3055_s27 = smov 8  }
  0x25   :  { %63 = dma.hbm_to_vmem [thread:$0]  %s3659_s3, 512, %s58_s16, [#allocation9], %s3054_s25, %s3054_s25, %s3055_s27  }
  0x26   :  { %s2953_s9 = scalar_lea.hbm %s3656_s0, 512 }
  0x27   :  { %p2954_p2 = scmp.ne.s32.totalorder %s3656_s0, %s2953_s9  ;;  %p2957_p3 = scmp.lt.u32.totalorder %s2953_s9, %s3656_s0 }
  0x29   :  { %p2959_p4 = pnand %p2957_p3, %p2954_p2 }
  0x2b   :  { %2962 = shalt.err (!%p2959_p4)
}
  0x2c   :  { %s2963_s14 = scalar_lea.vmem %s22_s18, 512  ;;  %p2968_p6 = scmp.lt.s32.totalorder %s22_s18, %s22_s18 }
  0x2d   :  { %p2964_p5 = scmp.ne.s32.totalorder %s22_s18, %s2963_s14  ;;  %p2969_p7 = scmp.lt.s32.totalorder %s2963_s14, %s2963_s14 }
  0x2f   :  { %p2970_p8 = por %p2969_p7, %p2968_p6 }
  0x31   :  { %p2971_p9 = pnand %p2970_p8, %p2964_p5 }
  0x33   :  { %2974 = shalt.err (!%p2971_p9)
}
  0x34   :  { %27 = dma.hbm_to_vmem [thread:$0]  %s3656_s0, 512, %s22_s18, [#allocation3], %s3054_s25, %s3054_s25, %s3055_s27  }
  0x35   :  { %s3056_s16 = smov [#allocation7]   ;;  %s3057_s19 = smov [#allocation10]  }
  0x36   :  { %s45_s17 = sshll.u32 %s3056_s16, 4  ;;  %s69_s20 = sshll.u32 %s3057_s19, 4  ;;  %s46_s17 = int_to_ptr.vmem [resolvable:$true] %s45_s17  ;;  %s70_s20 = int_to_ptr.vmem [resolvable:$true] %s69_s20 }
  0x37   :  { %s2975_s23 = scalar_lea.hbm %s3658_s2, 512 }
  0x38   :  { %p2976_p10 = scmp.ne.s32.totalorder %s3658_s2, %s2975_s23  ;;  %p2979_p11 = scmp.lt.u32.totalorder %s2975_s23, %s3658_s2 }
  0x3a   :  { %p2981_p12 = pnand %p2979_p11, %p2976_p10 }
  0x3c   :  { %2984 = shalt.err (!%p2981_p12)
}
  0x3d   :  { %s2985_s0 = scalar_lea.vmem %s46_s17, 512  ;;  %p2990_p0 = scmp.lt.s32.totalorder %s46_s17, %s46_s17 }
  0x3e   :  { %p2986_p13 = scmp.ne.s32.totalorder %s46_s17, %s2985_s0  ;;  %p2991_p1 = scmp.lt.s32.totalorder %s2985_s0, %s2985_s0 }
  0x40   :  { %p2992_p2 = por %p2991_p1, %p2990_p0 }
  0x42   :  { %p2993_p3 = pnand %p2992_p2, %p2986_p13 }
  0x44   :  { %2996 = shalt.err (!%p2993_p3)
}
  0x45   :  { %51 = dma.hbm_to_vmem [thread:$0]  %s3658_s2, 512, %s46_s17, [#allocation6], %s3054_s25, %s3054_s25, %s3055_s27  }
  0x46   :  { %s2997_s9 = scalar_lea.hbm %s3660_s4, 2048 }
  0x47   :  { %p2998_p4 = scmp.ne.s32.totalorder %s3660_s4, %s2997_s9  ;;  %p3001_p5 = scmp.lt.u32.totalorder %s2997_s9, %s3660_s4 }
  0x49   :  { %p3003_p6 = pnand %p3001_p5, %p2998_p4 }
  0x4b   :  { %3006 = shalt.err (!%p3003_p6)
}
  0x4c   :  { %s3007_s14 = scalar_lea.vmem %s70_s20, 2048  ;;  %p3012_p8 = scmp.lt.s32.totalorder %s70_s20, %s70_s20 }
  0x4d   :  { %p3008_p7 = scmp.ne.s32.totalorder %s70_s20, %s3007_s14  ;;  %p3013_p9 = scmp.lt.s32.totalorder %s3007_s14, %s3007_s14 }
  0x4f   :  { %p3014_p10 = por %p3013_p9, %p3012_p8 }
  0x51   :  { %p3015_p11 = pnand %p3014_p10, %p3008_p7 }
  0x53   :  { %3018 = shalt.err (!%p3015_p11)
}
  0x54   :  { %75 = dma.hbm_to_vmem [thread:$0]  %s3660_s4, 2048, %s70_s20, [#allocation9], %s3054_s25, %s3054_s25, %s3055_s27  }
  0x55   :  { %3041 = dma.done.wait [#allocation3], 512  }
  0x56   :  { %3042 = vsyncadd [#allocation3], 4294966784 }
  0x57   :  { %3043 = dma.done.wait [#allocation6], 6656  }
  0x58   :  { %3044 = vsyncadd [#allocation6], 4294960640 }
  0x59   :  { %3045 = dma.done.wait [#allocation9], 2560  }
  0x5a   :  { %3046 = vsyncadd [#allocation9], 4294964736  ;;  %v3666_v0 = vmov 0.0   ;;  %v100_v1 = vld [vmem:[#allocation5 + $0x8] sm:$0xff]  ;;  %v103_v2 = vld [vmem:[#allocation5 + $0x20] sm:$0xff]  ;;  %vm347_vm0 = vcmask 261120  }
  0x5b   :  { %237 = vmatprep.mubr.f32.mxu0 %v3666_v0  ;;  %v101_v3 = vld [vmem:[#allocation5 + $0x10] sm:$0xff]  ;;  %v3175_v4 = vpack.c.bf16 %v103_v2, %v100_v1  ;;  %v104_v5 = vld [vmem:[#allocation5 + $0x28] sm:$0xff]  ;;  %v99_v6 = vld [vmem:[#allocation5] sm:$0xff]  ;;  %vm3060_vm1 = vmmov 0  }
  0x5c   :  { %v102_v7 = vld [vmem:[#allocation5 + $0x18] sm:$0xff]  ;;  %v3177_v8 = vpack.c.bf16 %v104_v5, %v101_v3  ;;  %v109_v11 = vld [vmem:[#allocation5 + $0x50] sm:$0xff]  ;;  %v107_v12 = vld [vmem:[#allocation5 + $0x40] sm:$0xff] }
  0x5d   :  { %3685 = vst [vmem:[#allocation16_spill] sm:$0xff] %v3175_v4  ;;  %v3179_v9 = vpack.c.bf16 %v102_v7, %v99_v6  ;;  %v106_v10 = vld [vmem:[#allocation5 + $0x38] sm:$0xff]  ;;  %2507 = vmatprep.subr.bf16.mxu0 %v3175_v4  ;;  %v105_v15 = vld [vmem:[#allocation5 + $0x30] sm:$0xff]  ;;  %v108_v16 = vld [vmem:[#allocation5 + $0x48] sm:$0xff] }
  0x5e   :  { %v3182_v13 = vpack.c.bf16 %v109_v11, %v106_v10  ;;  %v110_v14 = vld [vmem:[#allocation5 + $0x58] sm:$0xff]  ;;  %2539 = vmatprep.subr.bf16.mxu1 %v3177_v8  ;;  %v3188_v18 = vpack.c.bf16 %v108_v16, %v105_v15  ;;  %v112_v19 = vld [vmem:[#allocation5 + $0x68] sm:$0xff]  ;;  %v115_v20 = vld [vmem:[#allocation5 + $0x80] sm:$0xff] }
  0x5f   :  { %2509 = vmatpush1.bf16.msra.mxu0 %v3179_v9  ;;  %v3186_v17 = vpack.c.bf16 %v110_v14, %v107_v12  ;;  %v113_v21 = vld [vmem:[#allocation5 + $0x70] sm:$0xff]  ;;  %2541 = vmatpush3.bf16.msra.mxu1 %v3177_v8  ;;  %v3192_v22 = vpack.c.bf16 %v115_v20, %v112_v19  ;;  %v116_v23 = vld [vmem:[#allocation5 + $0x88] sm:$0xff]  ;;  %v111_v24 = vld [vmem:[#allocation5 + $0x60] sm:$0xff] }
  0x60   :  { %2511 = vmatprep.subr.bf16.mxu0 %v3182_v13  ;;  %v114_v25 = vld [vmem:[#allocation5 + $0x78] sm:$0xff]  ;;  %v3195_v26 = vpack.c.bf16 %v116_v23, %v113_v21  ;;  %v121_v28 = vld [vmem:[#allocation5 + $0xb0] sm:$0xff]  ;;  %v119_v29 = vld [vmem:[#allocation5 + $0xa0] sm:$0xff] }
  0x61   :  { %2543 = vmatprep.subr.bf16.mxu1 %v3186_v17  ;;  %v118_v27 = vld [vmem:[#allocation5 + $0x98] sm:$0xff]  ;;  %v3198_v31 = vpack.c.bf16 %v114_v25, %v111_v24  ;;  %v117_v33 = vld [vmem:[#allocation5 + $0x90] sm:$0xff]  ;;  %v120_v34 = vld [vmem:[#allocation5 + $0xa8] sm:$0xff] }
  0x62   :  { %v122_v30 = vld [vmem:[#allocation5 + $0xb8] sm:$0xff]  ;;  %v3202_v32 = vpack.c.bf16 %v121_v28, %v118_v27  ;;  %v124_v36 = vld [vmem:[#allocation5 + $0xc8] sm:$0xff]  ;;  %v127_v37 = vld [vmem:[#allocation5 + $0xe0] sm:$0xff]  ;;  %v3208_v40 = vpack.c.bf16 %v120_v34, %v117_v33 }
  0x63   :  { %2513 = vmatpush1.bf16.msra.mxu0 %v3188_v18  ;;  %2545 = vmatpush3.bf16.msra.mxu1 %v3186_v17  ;;  %v3205_v35 = vpack.c.bf16 %v122_v30, %v119_v29  ;;  %v125_v38 = vld [vmem:[#allocation5 + $0xd0] sm:$0xff]  ;;  %v128_v39 = vld [vmem:[#allocation5 + $0xe8] sm:$0xff]  ;;  %v3212_v41 = vpack.c.bf16 %v127_v37, %v124_v36  ;;  %v123_v42 = vld [vmem:[#allocation5 + $0xc0] sm:$0xff] }
  0x64   :  { %2515 = vmatprep.subr.bf16.mxu0 %v3192_v22  ;;  %2547 = vmatprep.subr.bf16.mxu1 %v3195_v26  ;;  %v126_v43 = vld [vmem:[#allocation5 + $0xd8] sm:$0xff]  ;;  %v3215_v44 = vpack.c.bf16 %v128_v39, %v125_v38  ;;  %v133_v46 = vld [vmem:[#allocation5 + $0x110] sm:$0xff]  ;;  %v131_v47 = vld [vmem:[#allocation5 + $0x100] sm:$0xff] }
  0x65   :  { %v130_v45 = vld [vmem:[#allocation5 + $0xf8] sm:$0xff]  ;;  %v3218_v49 = vpack.c.bf16 %v126_v43, %v123_v42  ;;  %v129_v51 = vld [vmem:[#allocation5 + $0xf0] sm:$0xff]  ;;  %v132_v52 = vld [vmem:[#allocation5 + $0x108] sm:$0xff] }
  0x66   :  { %v134_v48 = vld [vmem:[#allocation5 + $0x118] sm:$0xff]  ;;  %v3222_v50 = vpack.c.bf16 %v133_v46, %v130_v45  ;;  %v3224_v53 = vld [vmem:[#allocation2] sm:$0xff]  ;;  %v136_v55 = vld [vmem:[#allocation5 + $0x128] sm:$0xff]  ;;  %v3231_v59 = vpack.c.bf16 %v132_v52, %v129_v51 }
  0x67   :  { %2517 = vmatpush1.bf16.msra.mxu0 %v3198_v31  ;;  %2549 = vmatpush3.bf16.msra.mxu1 %v3195_v26  ;;  %v3227_v54 = vpack.c.bf16 %v134_v48, %v131_v47  ;;  %v139_v56 = vld [vmem:[#allocation5 + $0x140] sm:$0xff]  ;;  %v137_v57 = vld [vmem:[#allocation5 + $0x130] sm:$0xff]  ;;  %v140_v58 = vld [vmem:[#allocation5 + $0x148] sm:$0xff]  ;;  %v3664_v47 = vmov 0.0|0.0  }
  0x68   :  { %2519 = vmatprep.subr.bf16.mxu0 %v3202_v32  ;;  %2551 = vmatprep.subr.bf16.mxu1 %v3205_v35  ;;  %v3235_v60 = vpack.c.bf16 %v139_v56, %v136_v55  ;;  %v135_v61 = vld [vmem:[#allocation5 + $0x120] sm:$0xff]  ;;  %v138_v62 = vld [vmem:[#allocation5 + $0x138] sm:$0xff]  ;;  %v3238_v63 = vpack.c.bf16 %v140_v58, %v137_v57  ;;  %v145_v2 = vld [vmem:[#allocation5 + $0x170] sm:$0xff] }
  0x69   :  { %2130 = vmatprep.mubr.f32.mxu1 %v3224_v53  ;;  %v142_v1 = vld [vmem:[#allocation5 + $0x158] sm:$0xff]  ;;  %v143_v3 = vld [vmem:[#allocation5 + $0x160] sm:$0xff]  ;;  %v3241_v6 = vpack.c.bf16 %v138_v62, %v135_v61  ;;  %v141_v10 = vld [vmem:[#allocation5 + $0x150] sm:$0xff] }
  0x6a   :  { %v146_v5 = vld [vmem:[#allocation5 + $0x178] sm:$0xff]  ;;  %v3245_v7 = vpack.c.bf16 %v145_v2, %v142_v1  ;;  %v144_v11 = vld [vmem:[#allocation5 + $0x168] sm:$0xff]  ;;  %v3263_v16 = vld [vmem:[#allocation2 + $0x10] sm:$0xff] }
  0x6b   :  { %2521 = vmatpush1.bf16.msra.mxu0 %v3208_v40  ;;  %2553 = vmatpush3.bf16.msra.mxu1 %v3205_v35  ;;  %v3248_v12 = vpack.c.bf16 %v146_v5, %v143_v3  ;;  %v3251_v14 = vpack.c.bf16 %v144_v11, %v141_v10  ;;  %v3259_v15 = vld [vmem:[#allocation2 + $0x8] sm:$0xff]  ;;  %v3266_v19 = vld [vmem:[#allocation2 + $0x18] sm:$0xff]  ;;  %v3274_v20 = vld [vmem:[#allocation7] sm:$0xff] }
  0x6c   :  { %2523 = vmatprep.subr.bf16.mxu0 %v3212_v41  ;;  %2555 = vmatprep.subr.bf16.mxu1 %v3215_v44  ;;  %v3278_v21 = vld [vmem:[#allocation8] sm:$0xff]  ;;  %v156_v43 = vld [vmem:[#allocation10 + $0x8] sm:$0xff]  ;;  %v3290_v46 = vld [vmem:[#allocation8 + $0x10] sm:$0xff] }
  0x6d   :  { %v155_v42 = vld [vmem:[#allocation10] sm:$0xff]  ;;  %v3288_v45 = vld [vmem:[#allocation8 + $0x8] sm:$0xff]  ;;  %v157_v56 = vld [vmem:[#allocation10 + $0x10] sm:$0xff] }
  0x6e   :  { %v3293_v51 = vpack.c.bf16 %v156_v43, %v155_v42  ;;  %v158_v57 = vld [vmem:[#allocation10 + $0x18] sm:$0xff]  ;;  %v3305_v61 = vld [vmem:[#allocation7 + $0x8] sm:$0xff]  ;;  %v3309_v1 = vld [vmem:[#allocation7 + $0x10] sm:$0xff] }
  0x6f   :  { %2525 = vmatpush1.bf16.msra.mxu0 %v3218_v49  ;;  %2557 = vmatpush3.bf16.msra.mxu1 %v3215_v44  ;;  %v3301_v58 = vld [vmem:[#allocation8 + $0x18] sm:$0xff]  ;;  %v3307_v62 = vpack.c.bf16 %v158_v57, %v157_v56  ;;  %v159_v3 = vld [vmem:[#allocation10 + $0x20] sm:$0xff]  ;;  %v160_v5 = vld [vmem:[#allocation10 + $0x28] sm:$0xff] }
  0x70   :  { %2527 = vmatprep.subr.bf16.mxu0 %v3222_v50  ;;  %2559 = vmatprep.subr.bf16.mxu1 %v3227_v54  ;;  %v3320_v2 = vld [vmem:[#allocation7 + $0x18] sm:$0xff]  ;;  %v3328_v10 = vpack.c.bf16 %v160_v5, %v159_v3  ;;  %v161_v11 = vld [vmem:[#allocation10 + $0x30] sm:$0xff] }
  0x71   :  { %3686 = vst [vmem:[#allocation17_spill] sm:$0xff] %v3320_v2  ;;  %v169_v43 = vld [vmem:[#allocation10 + $0x70] sm:$0xff] }
  0x72   :  { %3687 = vst [vmem:[#allocation18_spill] sm:$0xff] %v3328_v10 }
  0x73   :  { %2529 = vmatpush1.bf16.msra.mxu0 %v3231_v59  ;;  %2561 = vmatpush3.bf16.msra.mxu1 %v3227_v54 }
  0x74   :  { %2531 = vmatprep.subr.bf16.mxu0 %v3235_v60  ;;  %2563 = vmatprep.subr.bf16.mxu1 %v3238_v63 }
  0x77   :  { %2533 = vmatpush1.bf16.msra.mxu0 %v3241_v6  ;;  %2565 = vmatpush3.bf16.msra.mxu1 %v3238_v63 }
  0x78   :  { %2535 = vmatprep.subr.bf16.mxu0 %v3245_v7  ;;  %2567 = vmatprep.subr.bf16.mxu1 %v3248_v12 }
  0x7b   :  { %2537 = vmatpush1.bf16.msra.mxu0 %v3251_v14  ;;  %2569 = vmatpush3.bf16.msra.mxu1 %v3248_v12 }
  0x7e   :  { %238 = vmatmul.mubr.f32.vlgmr.msra.gmra.mrb[0].mxu0 %v3224_v53  ;;  %2131 = vmatmul.mubr.f32.vlgmr.msra.gmra.mrb[0].mxu1 %v3259_v15 }
  0x7f   :  { %243 = vmatprep.mubr.f32.mxu0 %v3666_v0  ;;  %2133 = vmatprep.mubr.f32.mxu1 %v3263_v16 }
  0x82   :  { %244 = vmatmul.mubr.f32.gmra.mrb[2].mxu0 %v3259_v15  ;;  %2134 = vmatmul.mubr.f32.gmra.mrb[2].mxu1 %v3266_v19 }
  0x83   :  { %249 = vmatprep.mubr.f32.mxu0 %v3666_v0  ;;  %2144 = vmatprep.mubr.msk.f32.mxu1 %vm347_vm0, %v3274_v20 }
  0x86   :  { %250 = vmatmul.mubr.f32.gmra.mrb[4].mxu0 %v3263_v16 }
  0x87   :  { %255 = vmatprep.mubr.f32.mxu0 %v3666_v0 }
  0x8a   :  { %256 = vmatmul.mubr.f32.gmra.mrb[6].mxu0 %v3266_v19 }
  0x8b   :  { %2158 = vmatprep.mubr.msk.f32.mxu0 %vm347_vm0, %v3278_v21 }
 0x151   :  { %v239_v23 = vpop.f32.mrb[0].mxu0  ;;  %v2132_v24 = vpop.f32.mrb[0].mxu1 }
 0x152   :  { %v3282_v25 = vpop.f32.mrb[1].mxu0  ;;  %v328_v27 = vpop.f32.mrb[1].mxu1 }
 0x153   :  { %v2578_v28 = vpack.c.bf16 %v2132_v24, %v328_v27  ;;  %v163_v27 = vld [vmem:[#allocation10 + $0x40] sm:$0xff] }
 0x155   :  { %v245_v29 = vpop.f32.mrb[2].mxu0  ;;  %2579 = vmatprep.subr.bf16.mxu0 %v2578_v28  ;;  %v2135_v34 = vpop.f32.mrb[2].mxu1 }
 0x156   :  { %v2570_v30 = vpack.c.bf16 %v245_v29, %v239_v23  ;;  %v3284_v33 = vpop.f32.mrb[3].mxu0  ;;  %2581 = vmatpush3.bf16.msra.mxu0 %v2578_v28  ;;  %v338_v36 = vpop.f32.mrb[3].mxu1  ;;  %v162_v23 = vld [vmem:[#allocation10 + $0x38] sm:$0xff]  ;;  %v164_v28 = vld [vmem:[#allocation10 + $0x48] sm:$0xff] }
 0x157   :  { %v2582_v37 = vpack.c.bf16 %v2135_v34, %v338_v36  ;;  %v3334_v24 = vpack.c.bf16 %v162_v23, %v161_v11  ;;  %v3340_v29 = vpack.c.bf16 %v164_v28, %v163_v27  ;;  %v166_v34 = vld [vmem:[#allocation10 + $0x58] sm:$0xff] }
 0x158   :  { %2571 = vmatprep.subr.bf16.mxu1 %v2570_v30 }
 0x159   :  { %v251_v38 = vpop.f32.mrb[4].mxu0  ;;  %2573 = vmatpush3.bf16.msra.mxu1 %v2570_v30  ;;  %2583 = vmatprep.subr.bf16.mxu0 %v2582_v37  ;;  %3688 = vst [vmem:[#allocation19_spill] sm:$0xff] %v3334_v24  ;;  %3689 = vst [vmem:[#allocation20_spill] sm:$0xff] %v3340_v29  ;;  %v165_v30 = vld [vmem:[#allocation10 + $0x50] sm:$0xff] }
 0x15a   :  { %v3286_v39 = vpop.f32.mrb[5].mxu0  ;;  %2585 = vmatpush3.bf16.msra.mxu0 %v2582_v37  ;;  %v3346_v36 = vpack.c.bf16 %v166_v34, %v165_v30  ;;  %v167_v37 = vld [vmem:[#allocation10 + $0x60] sm:$0xff] }
 0x15b   :  { %2610 = vmatprep.subr.bf16.mxu0 %v3664_v47 }
 0x15c   :  { %3690 = vst [vmem:[#allocation21_spill] sm:$0xff] %v3346_v36 }
 0x15d   :  { %v257_v48 = vpop.f32.mrb[6].mxu0  ;;  %2159 = vmatmul.mubr.msk.f32.vlgmr.msra.gmra.mrb[8].mxu0 %vm347_vm0, %v3288_v45 }
 0x15e   :  { %v2574_v52 = vpack.c.bf16 %v257_v48, %v251_v38  ;;  %v3295_v55 = vpop.f32.mrb[7].mxu0  ;;  %2161 = vmatprep.mubr.msk.f32.mxu0 %vm347_vm0, %v3290_v46  ;;  %2612 = vmatpush3.bf16.msra.mxu0 %v3293_v51  ;;  %v168_v38 = vld [vmem:[#allocation10 + $0x68] sm:$0xff]  ;;  %v170_v48 = vld [vmem:[#allocation10 + $0x78] sm:$0xff] }
 0x15f   :  { %2613 = vmatprep.subr.bf16.mxu0 %v3664_v47  ;;  %v3352_v42 = vpack.c.bf16 %v168_v38, %v167_v37 }
 0x160   :  { %2575 = vmatprep.subr.bf16.mxu1 %v2574_v52 }
 0x161   :  { %2577 = vmatpush3.bf16.msra.mxu1 %v2574_v52  ;;  %2162 = vmatmul.mubr.msk.f32.gmra.mrb[10].mxu0 %vm347_vm0, %v3301_v58  ;;  %3691 = vst [vmem:[#allocation22_spill] sm:$0xff] %v3352_v42  ;;  %v3358_v52 = vpack.c.bf16 %v170_v48, %v169_v43 }
 0x162   :  { %2586 = vmatprep.subr.bf16.mxu1 %v3664_v47  ;;  %2615 = vmatpush3.bf16.msra.mxu0 %v3307_v62 }
 0x163   :  { %2616 = vmatprep.subr.bf16.mxu0 %v3664_v47  ;;  %3692 = vst [vmem:[#allocation23_spill] sm:$0xff] %v3358_v52  ;;  %2231 = vmatprep.mubr.msk.f32.mxu0 %vm3060_vm1, %v3666_v0 }
 0x164   :  { %2145 = vmatmul.mubr.msk.f32.vlgmr.msra.gmra.mrb[4].mxu1 %vm347_vm0, %v3305_v61 }
 0x165   :  { %2147 = vmatprep.mubr.msk.f32.mxu1 %vm347_vm0, %v3309_v1  ;;  %2588 = vmatpush3.bf16.msra.mxu1 %v3293_v51 }
 0x166   :  { %2589 = vmatprep.subr.bf16.mxu1 %v3664_v47  ;;  %2618 = vmatpush3.bf16.msra.mxu0 %v3328_v10 }
 0x167   :  { %2619 = vmatprep.subr.bf16.mxu0 %v3664_v47 }
 0x168   :  { %2148 = vmatmul.mubr.msk.f32.gmra.mrb[6].mxu1 %vm347_vm0, %v3320_v2 }
 0x169   :  { %2591 = vmatpush3.bf16.msra.mxu1 %v3307_v62  ;;  %2196 = vmatprep.mubr.msk.f32.mxu1 %vm3060_vm1, %v3666_v0 }
 0x16a   :  { %2592 = vmatprep.subr.bf16.mxu1 %v3664_v47  ;;  %2621 = vmatpush3.bf16.msra.mxu0 %v3334_v24 }
 0x16b   :  { %2622 = vmatprep.subr.bf16.mxu0 %v3664_v47 }
 0x16d   :  { %2594 = vmatpush3.bf16.msra.mxu1 %v3328_v10 }
 0x16e   :  { %2595 = vmatprep.subr.bf16.mxu1 %v3664_v47  ;;  %2624 = vmatpush3.bf16.msra.mxu0 %v3340_v29 }
 0x16f   :  { %2625 = vmatprep.subr.bf16.mxu0 %v3664_v47 }
 0x171   :  { %2597 = vmatpush3.bf16.msra.mxu1 %v3334_v24 }
 0x172   :  { %2598 = vmatprep.subr.bf16.mxu1 %v3664_v47  ;;  %2627 = vmatpush3.bf16.msra.mxu0 %v3346_v36 }
 0x173   :  { %2628 = vmatprep.subr.bf16.mxu0 %v3664_v47 }
 0x175   :  { %2600 = vmatpush3.bf16.msra.mxu1 %v3340_v29 }
 0x176   :  { %2601 = vmatprep.subr.bf16.mxu1 %v3664_v47  ;;  %2630 = vmatpush3.bf16.msra.mxu0 %v3352_v42 }
 0x177   :  { %2631 = vmatprep.subr.bf16.mxu0 %v3664_v47 }
 0x179   :  { %2603 = vmatpush3.bf16.msra.mxu1 %v3346_v36  ;;  %v3693_v36 = vmov 0.0  }
 0x17a   :  { %2604 = vmatprep.subr.bf16.mxu1 %v3664_v47  ;;  %2633 = vmatpush3.bf16.msra.mxu0 %v3358_v52 }
 0x17b   :  { %2667 = vmatprep.subr.bf16.mxu0 %v3177_v8 }
 0x17d   :  { %2606 = vmatpush3.bf16.msra.mxu1 %v3352_v42 }
 0x17e   :  { %2607 = vmatprep.subr.bf16.mxu1 %v3664_v47 }
 0x181   :  { %2609 = vmatpush3.bf16.msra.mxu1 %v3358_v52 }
 0x182   :  { %2635 = vmatprep.subr.bf16.mxu1 %v3175_v4 }
 0x230   :  { %v2160_v56 = vpop.f32.mrb[8].mxu0 }
 0x231   :  { %v527_v57 = vpop.f32.mrb[9].mxu0 }
 0x234   :  { %v2163_v3 = vpop.f32.mrb[10].mxu0 }
 0x235   :  { %v537_v5 = vpop.f32.mrb[11].mxu0 }
 0x237   :  { %v2146_v11 = vpop.f32.mrb[4].mxu1 }
 0x238   :  { %v446_v23 = vadd.f32 %v2146_v11, %v3284_v33  ;;  %v426_v27 = vpop.f32.mrb[5].mxu1 }
 0x239   :  { %v445_v28 = vadd.f32 %v426_v27, %v3282_v25 }
 0x23a   :  { %v3370_v30 = vadd.f32 %v2160_v56, %v446_v23 }
 0x23b   :  { %v3372_v34 = vadd.f32 %v527_v57, %v445_v28  ;;  %v2149_v37 = vpop.f32.mrb[6].mxu1 }
 0x23c   :  { %v448_v38 = vadd.f32 %v2149_v37, %v3295_v55  ;;  %v436_v43 = vpop.f32.mrb[7].mxu1  ;;  %v560_v48 = vmul.f32 %v3370_v30, %v3370_v30 }
 0x23d   :  { %v559_v47 = vmul.f32 %v3372_v34, %v3372_v34  ;;  %v447_v0 = vadd.f32 %v436_v43, %v3286_v39  ;;  %v550_v25 = vadd.f32 %v3370_v30, %v3372_v34 }
 0x23e   :  { %v3380_v33 = vadd.f32 %v2163_v3, %v448_v38 }
 0x23f   :  { %v3384_v56 = vadd.f32 %v537_v5, %v447_v0  ;;  %v563_v57 = vadd.f32 %v560_v48, %v559_v47 }
 0x240   :  { %v562_v23 = vmul.f32 %v3380_v33, %v3380_v33 }
 0x241   :  { %v551_v11 = vadd.f32 %v550_v25, %v3384_v56  ;;  %v561_v55 = vmul.f32 %v3384_v56, %v3384_v56 }
 0x243   :  { %v552_v27 = vadd.f32 %v551_v11, %v3380_v33  ;;  %v564_v28 = vadd.f32 %v563_v57, %v561_v55 }
 0x245   :  { %v553_v39 = vrot.slane %v552_v27, 4  ;;  %v565_v3 = vadd.f32 %v564_v28, %v562_v23 }
 0x247   :  { %v554_v37 = vadd.f32 %v553_v39, %v552_v27  ;;  %v566_v38 = vrot.slane %v565_v3, 4  ;;  %v720_v27 = vlaneseq  ;;  %v3426_v39 = vld [vmem:[%s3661_s5] sm:$0x1]  ;;  %s3061_s5 = smov [#allocation11]  }
 0x249   :  { %v555_v43 = vrot.slane %v554_v37, 2  ;;  %v567_v4 = vadd.f32 %v566_v38, %v565_v3  ;;  %v721_v28 = vshrl.u32 %v720_v27, 7 }
 0x24b   :  { %v556_v0 = vadd.f32 %v555_v43, %v554_v37  ;;  %v568_v5 = vrot.slane %v567_v4, 2  ;;  %v3428_v3 = vsub.s32 0, %v721_v28  ;;  %v3434_v43 = vld [vmem:[%s3662_s6] sm:$0x1]  ;;  %s1850_s6 = sshll.u32 %s3061_s5, 4  ;;  %s1851_s6 = int_to_ptr.vmem [resolvable:$true] %s1850_s6 }
 0x24c   :  { %s3019_s19 = scalar_lea.vmem %s1851_s6, 512  ;;  %p3024_p13 = scmp.lt.s32.totalorder %s1851_s6, %s1851_s6 }
 0x24d   :  { %v557_v47 = vrot.slane %v556_v0, 1  ;;  %v569_v48 = vadd.f32 %v568_v5, %v567_v4  ;;  %p3020_p12 = scmp.ne.s32.totalorder %s1851_s6, %s3019_s19  ;;  %p3025_p0 = scmp.lt.s32.totalorder %s3019_s19, %s3019_s19 }
 0x24f   :  { %v558_v25 = vadd.f32 %v557_v47, %v556_v0  ;;  %v570_v52 = vrot.slane %v569_v48, 1  ;;  %p3026_p1 = por %p3025_p0, %p3024_p13 }
 0x251   :  { %2197 = vmatmul.mubr.f32.vlgmr.msra.gmra.mrb[8].mxu1 %v558_v25  ;;  %v571_v42 = vadd.f32 %v570_v52, %v569_v48  ;;  %p3027_p2 = pnand %p3026_p1, %p3020_p12 }
 0x252   :  { %2637 = vmatpush1.bf16.msra.mxu1 %v3179_v9  ;;  %811 = vmatprep.mubr.f32.mxu1 %v3693_v36 }
 0x253   :  { %2232 = vmatmul.mubr.f32.vlgmr.msra.gmra.mrb[12].mxu0 %v571_v42  ;;  %2639 = vmatprep.subr.bf16.mxu1 %v3182_v13 }
 0x254   :  { %2669 = vmatpush3.bf16.msra.mxu0 %v3177_v8 }
 0x255   :  { %2671 = vmatprep.subr.bf16.mxu0 %v3186_v17 }
 0x256   :  { %2641 = vmatpush1.bf16.msra.mxu1 %v3188_v18 }
 0x257   :  { %2643 = vmatprep.subr.bf16.mxu1 %v3192_v22 }
 0x258   :  { %2673 = vmatpush3.bf16.msra.mxu0 %v3186_v17 }
 0x259   :  { %2675 = vmatprep.subr.bf16.mxu0 %v3195_v26 }
 0x25a   :  { %2645 = vmatpush1.bf16.msra.mxu1 %v3198_v31 }
 0x25b   :  { %2647 = vmatprep.subr.bf16.mxu1 %v3202_v32 }
 0x25c   :  { %2677 = vmatpush3.bf16.msra.mxu0 %v3195_v26 }
 0x25d   :  { %2679 = vmatprep.subr.bf16.mxu0 %v3205_v35 }
 0x25e   :  { %2649 = vmatpush1.bf16.msra.mxu1 %v3208_v40 }
 0x25f   :  { %2651 = vmatprep.subr.bf16.mxu1 %v3212_v41 }
 0x260   :  { %2681 = vmatpush3.bf16.msra.mxu0 %v3205_v35 }
 0x261   :  { %2683 = vmatprep.subr.bf16.mxu0 %v3215_v44 }
 0x262   :  { %2653 = vmatpush1.bf16.msra.mxu1 %v3218_v49 }
 0x263   :  { %2655 = vmatprep.subr.bf16.mxu1 %v3222_v50 }
 0x264   :  { %2685 = vmatpush3.bf16.msra.mxu0 %v3215_v44 }
 0x265   :  { %2687 = vmatprep.subr.bf16.mxu0 %v3227_v54 }
 0x266   :  { %2657 = vmatpush1.bf16.msra.mxu1 %v3231_v59 }
 0x267   :  { %2659 = vmatprep.subr.bf16.mxu1 %v3235_v60 }
 0x268   :  { %2689 = vmatpush3.bf16.msra.mxu0 %v3227_v54 }
 0x269   :  { %2691 = vmatprep.subr.bf16.mxu0 %v3238_v63 }
 0x26a   :  { %2661 = vmatpush1.bf16.msra.mxu1 %v3241_v6 }
 0x26b   :  { %2663 = vmatprep.subr.bf16.mxu1 %v3245_v7 }
 0x26c   :  { %2693 = vmatpush3.bf16.msra.mxu0 %v3238_v63 }
 0x26d   :  { %2695 = vmatprep.subr.bf16.mxu0 %v3248_v12 }
 0x26e   :  { %2665 = vmatpush1.bf16.msra.mxu1 %v3251_v14 }
 0x270   :  { %2697 = vmatpush3.bf16.msra.mxu0 %v3248_v12 }
 0x324   :  { %v638_v4 = vpop.f32.mrb[8].mxu1 }
 0x325   :  { %v712_v42 = vmul.f32 %v638_v4, %v638_v4  ;;  %v2198_v52 = vpop.f32.mrb[9].mxu1 }
 0x326   :  { %v708_v57 = vpop.f32.mrb[12].mxu0 }
 0x327   :  { %v713_v11 = vsub.f32 %v708_v57, %v712_v42  ;;  %v2233_v55 = vpop.f32.mrb[13].mxu0 }
 0x329   :  { %v714_v23 = vadd.f32 1e-05, %v713_v11 }
 0x32b   :  { %2903 = vrsqrt.f32 %v714_v23 }
 0x335   :  { %v2904_v37 = vpop.eup %2903 }
 0x336   :  { %v716_v38 = vmul.f32 %v2904_v37, %v3426_v39 }
 0x338   :  { %v717_v0 = vmul.f32 %v716_v38, %v638_v4  ;;  %v723_v5 = vrot.slane %v716_v38, %v3428_v3 }
 0x33a   :  { %v718_v47 = vsub.f32 %v3434_v43, %v717_v0  ;;  %v725_v48 = vmul.f32 %v723_v5, %v3372_v34  ;;  %v726_v42 = vmul.f32 %v723_v5, %v3370_v30  ;;  %v727_v52 = vmul.f32 %v723_v5, %v3384_v56 }
 0x33b   :  { %v728_v57 = vmul.f32 %v723_v5, %v3380_v33 }
 0x33c   :  { %v733_v25 = vrot.slane %v718_v47, %v3428_v3 }
 0x33e   :  { %v735_v11 = vadd.f32 %v733_v25, %v725_v48  ;;  %v736_v55 = vadd.f32 %v733_v25, %v726_v42  ;;  %v737_v23 = vadd.f32 %v733_v25, %v727_v52  ;;  %v738_v27 = vadd.f32 %v733_v25, %v728_v57 }
 0x340   :  { %v739_v28 = vmax.f32 %v735_v11, 0.0  ;;  %v740_v4 = vmax.f32 %v736_v55, 0.0  ;;  %v741_v37 = vmax.f32 %v737_v23, 0.0  ;;  %v742_v34 = vmax.f32 %v738_v27, 0.0 }
 0x342   :  { %v743_v38 = vadd.f32 %v739_v28, %v3224_v53  ;;  %v744_v0 = vadd.f32 %v740_v4, %v3259_v15  ;;  %v745_v30 = vadd.f32 %v741_v37, %v3263_v16  ;;  %v746_v33 = vadd.f32 %v742_v34, %v3266_v19  ;;  %v3695_v34 = vld [vmem:[#allocation21_spill] sm:$0xff] }
 0x343   :  { %v3694_v4 = vmov 0.0|0.0  }
 0x344   :  { %812 = vmatmul.mubr.f32.vlgmr.msra.gmra.mrb[10].mxu1 %v743_v38  ;;  %2266 = vmatprep.mubr.f32.mxu0 %v743_v38 }
 0x345   :  { %2267 = vmatmul.mubr.f32.vlgmr.msra.gmra.mrb[14].mxu0 %v744_v0  ;;  %817 = vmatprep.mubr.f32.mxu1 %v3693_v36 }
 0x346   :  { %2269 = vmatprep.mubr.f32.mxu0 %v745_v30 }
 0x348   :  { %818 = vmatmul.mubr.f32.gmra.mrb[12].mxu1 %v744_v0 }
 0x349   :  { %2270 = vmatmul.mubr.f32.gmra.mrb[16].mxu0 %v746_v33  ;;  %823 = vmatprep.mubr.f32.mxu1 %v3693_v36 }
 0x34a   :  { %2280 = vmatprep.mubr.msk.f32.mxu0 %vm347_vm0, %v3274_v20 }
 0x34c   :  { %824 = vmatmul.mubr.f32.gmra.mrb[14].mxu1 %v745_v30  ;;  %v3696_v30 = vld [vmem:[#allocation22_spill] sm:$0xff] }
 0x34d   :  { %829 = vmatprep.mubr.f32.mxu1 %v3693_v36 }
 0x350   :  { %830 = vmatmul.mubr.f32.gmra.mrb[16].mxu1 %v746_v33  ;;  %v3697_v33 = vld [vmem:[#allocation23_spill] sm:$0xff] }
 0x351   :  { %2294 = vmatprep.mubr.msk.f32.mxu1 %vm347_vm0, %v3278_v21 }
 0x417   :  { %v813_v56 = vpop.f32.mrb[10].mxu1 }
 0x418   :  { %v3454_v5 = vpop.f32.mrb[11].mxu1  ;;  %v2268_v47 = vpop.f32.mrb[14].mxu0 }
 0x419   :  { %v902_v48 = vpop.f32.mrb[15].mxu0 }
 0x41a   :  { %v2706_v25 = vpack.c.bf16 %v2268_v47, %v902_v48 }
 0x41b   :  { %v819_v42 = vpop.f32.mrb[12].mxu1 }
 0x41c   :  { %v2698_v52 = vpack.c.bf16 %v819_v42, %v813_v56  ;;  %v3456_v57 = vpop.f32.mrb[13].mxu1  ;;  %v2271_v11 = vpop.f32.mrb[16].mxu0  ;;  %2707 = vmatprep.subr.bf16.mxu1 %v2706_v25  ;;  %v3698_v56 = vld [vmem:[#allocation16_spill] sm:$0xff] }
 0x41d   :  { %v912_v55 = vpop.f32.mrb[17].mxu0  ;;  %2709 = vmatpush3.bf16.msra.mxu1 %v2706_v25 }
 0x41e   :  { %v2710_v23 = vpack.c.bf16 %v2271_v11, %v912_v55  ;;  %2699 = vmatprep.subr.bf16.mxu0 %v2698_v52 }
 0x41f   :  { %v825_v27 = vpop.f32.mrb[14].mxu1  ;;  %2701 = vmatpush3.bf16.msra.mxu0 %v2698_v52 }
 0x420   :  { %v3458_v28 = vpop.f32.mrb[15].mxu1  ;;  %2711 = vmatprep.subr.bf16.mxu1 %v2710_v23 }
 0x421   :  { %2713 = vmatpush3.bf16.msra.mxu1 %v2710_v23 }
 0x422   :  { %2738 = vmatprep.subr.bf16.mxu1 %v3694_v4 }
 0x423   :  { %v831_v37 = vpop.f32.mrb[16].mxu1 }
 0x424   :  { %v2702_v38 = vpack.c.bf16 %v831_v37, %v825_v27  ;;  %v833_v0 = vpop.f32.mrb[17].mxu1  ;;  %2295 = vmatmul.mubr.msk.f32.vlgmr.msra.gmra.mrb[18].mxu1 %vm347_vm0, %v3288_v45 }
 0x425   :  { %2297 = vmatprep.mubr.msk.f32.mxu1 %vm347_vm0, %v3290_v46  ;;  %2740 = vmatpush3.bf16.msra.mxu1 %v3293_v51 }
 0x426   :  { %2703 = vmatprep.subr.bf16.mxu0 %v2702_v38  ;;  %2741 = vmatprep.subr.bf16.mxu1 %v3694_v4 }
 0x427   :  { %2705 = vmatpush3.bf16.msra.mxu0 %v2702_v38 }
 0x428   :  { %2298 = vmatmul.mubr.msk.f32.gmra.mrb[20].mxu1 %vm347_vm0, %v3301_v58  ;;  %2714 = vmatprep.subr.bf16.mxu0 %v3694_v4 }
 0x429   :  { %2743 = vmatpush3.bf16.msra.mxu1 %v3307_v62  ;;  %2367 = vmatprep.mubr.msk.f32.mxu1 %vm3060_vm1, %v3693_v36 }
 0x42a   :  { %2281 = vmatmul.mubr.msk.f32.vlgmr.msra.gmra.mrb[18].mxu0 %vm347_vm0, %v3305_v61  ;;  %2744 = vmatprep.subr.bf16.mxu1 %v3694_v4 }
 0x42b   :  { %2283 = vmatprep.mubr.msk.f32.mxu0 %vm347_vm0, %v3309_v1  ;;  %2716 = vmatpush3.bf16.msra.mxu0 %v3293_v51 }
 0x42c   :  { %2717 = vmatprep.subr.bf16.mxu0 %v3694_v4 }
 0x42d   :  { %2746 = vmatpush3.bf16.msra.mxu1 %v3328_v10 }
 0x42e   :  { %2284 = vmatmul.mubr.msk.f32.gmra.mrb[20].mxu0 %vm347_vm0, %v3320_v2  ;;  %2747 = vmatprep.subr.bf16.mxu1 %v3694_v4 }
 0x42f   :  { %2719 = vmatpush3.bf16.msra.mxu0 %v3307_v62  ;;  %2332 = vmatprep.mubr.msk.f32.mxu0 %vm3060_vm1, %v3693_v36 }
 0x430   :  { %2720 = vmatprep.subr.bf16.mxu0 %v3694_v4 }
 0x431   :  { %2749 = vmatpush3.bf16.msra.mxu1 %v3334_v24 }
 0x432   :  { %2750 = vmatprep.subr.bf16.mxu1 %v3694_v4 }
 0x433   :  { %2722 = vmatpush3.bf16.msra.mxu0 %v3328_v10 }
 0x434   :  { %2723 = vmatprep.subr.bf16.mxu0 %v3694_v4 }
 0x435   :  { %2752 = vmatpush3.bf16.msra.mxu1 %v3340_v29 }
 0x436   :  { %2753 = vmatprep.subr.bf16.mxu1 %v3694_v4 }
 0x437   :  { %2725 = vmatpush3.bf16.msra.mxu0 %v3334_v24 }
 0x438   :  { %2726 = vmatprep.subr.bf16.mxu0 %v3694_v4 }
 0x439   :  { %2755 = vmatpush3.bf16.msra.mxu1 %v3695_v34 }
 0x43a   :  { %2756 = vmatprep.subr.bf16.mxu1 %v3694_v4 }
 0x43b   :  { %2728 = vmatpush3.bf16.msra.mxu0 %v3340_v29 }
 0x43c   :  { %2729 = vmatprep.subr.bf16.mxu0 %v3694_v4 }
 0x43d   :  { %2758 = vmatpush3.bf16.msra.mxu1 %v3696_v30 }
 0x43e   :  { %2759 = vmatprep.subr.bf16.mxu1 %v3694_v4 }
 0x43f   :  { %2731 = vmatpush3.bf16.msra.mxu0 %v3695_v34 }
 0x440   :  { %2732 = vmatprep.subr.bf16.mxu0 %v3694_v4 }
 0x441   :  { %2761 = vmatpush3.bf16.msra.mxu1 %v3697_v33 }
 0x442   :  { %2795 = vmatprep.subr.bf16.mxu1 %v3177_v8 }
 0x443   :  { %2734 = vmatpush3.bf16.msra.mxu0 %v3696_v30 }
 0x444   :  { %2735 = vmatprep.subr.bf16.mxu0 %v3694_v4 }
 0x447   :  { %2737 = vmatpush3.bf16.msra.mxu0 %v3697_v33 }
 0x448   :  { %2763 = vmatprep.subr.bf16.mxu0 %v3698_v56 }
 0x4f7   :  { %v2296_v47 = vpop.f32.mrb[18].mxu1 }
 0x4f8   :  { %v1076_v48 = vpop.f32.mrb[19].mxu1 }
 0x4fb   :  { %v2299_v25 = vpop.f32.mrb[20].mxu1 }
 0x4fc   :  { %v1086_v42 = vpop.f32.mrb[21].mxu1 }
 0x4fd   :  { %v2282_v52 = vpop.f32.mrb[18].mxu0 }
 0x4fe   :  { %v1007_v11 = vadd.f32 %v2282_v52, %v3456_v57  ;;  %v987_v55 = vpop.f32.mrb[19].mxu0 }
 0x4ff   :  { %v1006_v23 = vadd.f32 %v987_v55, %v3454_v5 }
 0x500   :  { %v3512_v27 = vadd.f32 %v2296_v47, %v1007_v11 }
 0x501   :  { %v3514_v37 = vadd.f32 %v1076_v48, %v1006_v23  ;;  %v2285_v38 = vpop.f32.mrb[20].mxu0 }
 0x502   :  { %v1009_v30 = vadd.f32 %v2285_v38, %v833_v0  ;;  %v997_v34 = vpop.f32.mrb[21].mxu0  ;;  %v1109_v56 = vmul.f32 %v3512_v27, %v3512_v27 }
 0x503   :  { %v1108_v33 = vmul.f32 %v3514_v37, %v3514_v37  ;;  %v1008_v29 = vadd.f32 %v997_v34, %v3458_v28  ;;  %v1099_v5 = vadd.f32 %v3512_v27, %v3514_v37 }
 0x504   :  { %v3521_v24 = vadd.f32 %v2299_v25, %v1009_v30 }
 0x505   :  { %v3525_v57 = vadd.f32 %v1086_v42, %v1008_v29  ;;  %v1112_v47 = vadd.f32 %v1109_v56, %v1108_v33 }
 0x506   :  { %v1111_v52 = vmul.f32 %v3521_v24, %v3521_v24 }
 0x507   :  { %v1100_v48 = vadd.f32 %v1099_v5, %v3525_v57  ;;  %v1110_v0 = vmul.f32 %v3525_v57, %v3525_v57 }
 0x509   :  { %v1101_v11 = vadd.f32 %v1100_v48, %v3521_v24  ;;  %v1113_v55 = vadd.f32 %v1112_v47, %v1110_v0 }
 0x50b   :  { %v1102_v28 = vrot.slane %v1101_v11, 4  ;;  %v1114_v34 = vadd.f32 %v1113_v55, %v1111_v52 }
 0x50d   :  { %v1103_v30 = vadd.f32 %v1102_v28, %v1101_v11  ;;  %v1115_v25 = vrot.slane %v1114_v34, 4 }
 0x50f   :  { %v1104_v23 = vrot.slane %v1103_v30, 2  ;;  %v1116_v38 = vadd.f32 %v1115_v25, %v1114_v34 }
 0x511   :  { %v1105_v29 = vadd.f32 %v1104_v23, %v1103_v30  ;;  %v1117_v42 = vrot.slane %v1116_v38, 2 }
 0x513   :  { %v1106_v33 = vrot.slane %v1105_v29, 1  ;;  %v1118_v56 = vadd.f32 %v1117_v42, %v1116_v38 }
 0x515   :  { %v1107_v5 = vadd.f32 %v1106_v33, %v1105_v29  ;;  %v1119_v2 = vrot.slane %v1118_v56, 1 }
 0x517   :  { %2333 = vmatmul.mubr.f32.vlgmr.msra.gmra.mrb[22].mxu0 %v1107_v5  ;;  %v1120_v10 = vadd.f32 %v1119_v2, %v1118_v56 }
 0x518   :  { %2765 = vmatpush1.bf16.msra.mxu0 %v3179_v9  ;;  %1360 = vmatprep.mubr.f32.mxu0 %v3693_v36 }
 0x519   :  { %2368 = vmatmul.mubr.f32.vlgmr.msra.gmra.mrb[22].mxu1 %v1120_v10  ;;  %2767 = vmatprep.subr.bf16.mxu0 %v3182_v13 }
 0x51a   :  { %2797 = vmatpush3.bf16.msra.mxu1 %v3177_v8 }
 0x51b   :  { %2799 = vmatprep.subr.bf16.mxu1 %v3186_v17 }
 0x51c   :  { %2769 = vmatpush1.bf16.msra.mxu0 %v3188_v18 }
 0x51d   :  { %2771 = vmatprep.subr.bf16.mxu0 %v3192_v22 }
 0x51e   :  { %2801 = vmatpush3.bf16.msra.mxu1 %v3186_v17 }
 0x51f   :  { %2803 = vmatprep.subr.bf16.mxu1 %v3195_v26 }
 0x520   :  { %2773 = vmatpush1.bf16.msra.mxu0 %v3198_v31 }
 0x521   :  { %2775 = vmatprep.subr.bf16.mxu0 %v3202_v32 }
 0x522   :  { %2805 = vmatpush3.bf16.msra.mxu1 %v3195_v26 }
 0x523   :  { %2807 = vmatprep.subr.bf16.mxu1 %v3205_v35 }
 0x524   :  { %2777 = vmatpush1.bf16.msra.mxu0 %v3208_v40 }
 0x525   :  { %2779 = vmatprep.subr.bf16.mxu0 %v3212_v41 }
 0x526   :  { %2809 = vmatpush3.bf16.msra.mxu1 %v3205_v35 }
 0x527   :  { %2811 = vmatprep.subr.bf16.mxu1 %v3215_v44 }
 0x528   :  { %2781 = vmatpush1.bf16.msra.mxu0 %v3218_v49 }
 0x529   :  { %2783 = vmatprep.subr.bf16.mxu0 %v3222_v50 }
 0x52a   :  { %2813 = vmatpush3.bf16.msra.mxu1 %v3215_v44 }
 0x52b   :  { %2815 = vmatprep.subr.bf16.mxu1 %v3227_v54 }
 0x52c   :  { %2785 = vmatpush1.bf16.msra.mxu0 %v3231_v59 }
 0x52d   :  { %2787 = vmatprep.subr.bf16.mxu0 %v3235_v60 }
 0x52e   :  { %2817 = vmatpush3.bf16.msra.mxu1 %v3227_v54 }
 0x52f   :  { %2819 = vmatprep.subr.bf16.mxu1 %v3238_v63 }
 0x530   :  { %2789 = vmatpush1.bf16.msra.mxu0 %v3241_v6 }
 0x531   :  { %2791 = vmatprep.subr.bf16.mxu0 %v3245_v7 }
 0x532   :  { %2821 = vmatpush3.bf16.msra.mxu1 %v3238_v63 }
 0x533   :  { %2823 = vmatprep.subr.bf16.mxu1 %v3248_v12 }
 0x534   :  { %2793 = vmatpush1.bf16.msra.mxu0 %v3251_v14 }
 0x536   :  { %2825 = vmatpush3.bf16.msra.mxu1 %v3248_v12 }
 0x5ea   :  { %v1187_v8 = vpop.f32.mrb[22].mxu0 }
 0x5eb   :  { %v1261_v9 = vmul.f32 %v1187_v8, %v1187_v8  ;;  %v2334_v13 = vpop.f32.mrb[23].mxu0 }
 0x5ec   :  { %v1257_v17 = vpop.f32.mrb[22].mxu1 }
 0x5ed   :  { %v1262_v18 = vsub.f32 %v1257_v17, %v1261_v9  ;;  %v2369_v22 = vpop.f32.mrb[23].mxu1 }
 0x5ef   :  { %v1263_v26 = vadd.f32 1e-05, %v1262_v18 }
 0x5f1   :  { %2905 = vrsqrt.f32 %v1263_v26 }
 0x5fb   :  { %v2906_v31 = vpop.eup %2905 }
 0x5fc   :  { %v1265_v32 = vmul.f32 %v2906_v31, %v3426_v39 }
 0x5fe   :  { %v1266_v35 = vmul.f32 %v1265_v32, %v1187_v8  ;;  %v1272_v40 = vrot.slane %v1265_v32, %v3428_v3 }
 0x600   :  { %v1267_v41 = vsub.f32 %v3434_v43, %v1266_v35  ;;  %v1274_v44 = vmul.f32 %v1272_v40, %v3514_v37  ;;  %v1275_v50 = vmul.f32 %v1272_v40, %v3512_v27  ;;  %v1276_v54 = vmul.f32 %v1272_v40, %v3525_v57 }
 0x601   :  { %v1277_v59 = vmul.f32 %v1272_v40, %v3521_v24 }
 0x602   :  { %v1282_v49 = vrot.slane %v1267_v41, %v3428_v3 }
 0x604   :  { %v1284_v60 = vadd.f32 %v1282_v49, %v1274_v44  ;;  %v1285_v63 = vadd.f32 %v1282_v49, %v1275_v50  ;;  %v1286_v6 = vadd.f32 %v1282_v49, %v1276_v54  ;;  %v1287_v7 = vadd.f32 %v1282_v49, %v1277_v59 }
 0x606   :  { %v1288_v12 = vmax.f32 %v1284_v60, 0.0  ;;  %v1289_v14 = vmax.f32 %v1285_v63, 0.0  ;;  %v1290_v2 = vmax.f32 %v1286_v6, 0.0  ;;  %v1291_v37 = vmax.f32 %v1287_v7, 0.0 }
 0x608   :  { %v1292_v10 = vadd.f32 %v1288_v12, %v3224_v53  ;;  %v1293_v47 = vadd.f32 %v1289_v14, %v3259_v15  ;;  %v1294_v27 = vadd.f32 %v1290_v2, %v3263_v16  ;;  %v1295_v24 = vadd.f32 %v1291_v37, %v3266_v19 }
 0x60a   :  { %1361 = vmatmul.mubr.f32.vlgmr.msra.gmra.mrb[24].mxu0 %v1292_v10  ;;  %2402 = vmatprep.mubr.f32.mxu1 %v1292_v10 }
 0x60b   :  { %2403 = vmatmul.mubr.f32.vlgmr.msra.gmra.mrb[24].mxu1 %v1293_v47  ;;  %1366 = vmatprep.mubr.f32.mxu0 %v3693_v36 }
 0x60c   :  { %2405 = vmatprep.mubr.f32.mxu1 %v1294_v27 }
 0x60e   :  { %1367 = vmatmul.mubr.f32.gmra.mrb[26].mxu0 %v1293_v47 }
 0x60f   :  { %2406 = vmatmul.mubr.f32.gmra.mrb[26].mxu1 %v1295_v24  ;;  %1372 = vmatprep.mubr.f32.mxu0 %v3693_v36 }
 0x610   :  { %2416 = vmatprep.mubr.msk.f32.mxu1 %vm347_vm0, %v3274_v20 }
 0x612   :  { %1373 = vmatmul.mubr.f32.gmra.mrb[28].mxu0 %v1294_v27 }
 0x613   :  { %1378 = vmatprep.mubr.f32.mxu0 %v3693_v36 }
 0x616   :  { %1379 = vmatmul.mubr.f32.gmra.mrb[30].mxu0 %v1295_v24 }
 0x617   :  { %2430 = vmatprep.mubr.msk.f32.mxu0 %vm347_vm0, %v3278_v21 }
 0x6dd   :  { %v1362_v53 = vpop.f32.mrb[24].mxu0 }
 0x6de   :  { %v3583_v15 = vpop.f32.mrb[25].mxu0  ;;  %v2404_v16 = vpop.f32.mrb[24].mxu1 }
 0x6df   :  { %v1451_v57 = vpop.f32.mrb[25].mxu1 }
 0x6e0   :  { %v2834_v19 = vpack.c.bf16 %v2404_v16, %v1451_v57 }
 0x6e1   :  { %v1368_v48 = vpop.f32.mrb[26].mxu0 }
 0x6e2   :  { %v2826_v0 = vpack.c.bf16 %v1368_v48, %v1362_v53  ;;  %v1370_v52 = vpop.f32.mrb[27].mxu0  ;;  %v2407_v11 = vpop.f32.mrb[26].mxu1  ;;  %2835 = vmatprep.subr.bf16.mxu0 %v2834_v19 }
 0x6e3   :  { %v1461_v55 = vpop.f32.mrb[27].mxu1  ;;  %2837 = vmatpush3.bf16.msra.mxu0 %v2834_v19 }
 0x6e4   :  { %v2838_v20 = vpack.c.bf16 %v2407_v11, %v1461_v55  ;;  %2827 = vmatprep.subr.bf16.mxu1 %v2826_v0 }
 0x6e5   :  { %v1374_v28 = vpop.f32.mrb[28].mxu0  ;;  %2829 = vmatpush3.bf16.msra.mxu1 %v2826_v0 }
 0x6e6   :  { %v3585_v34 = vpop.f32.mrb[29].mxu0  ;;  %2839 = vmatprep.subr.bf16.mxu0 %v2838_v20 }
 0x6e7   :  { %2841 = vmatpush3.bf16.msra.mxu0 %v2838_v20 }
 0x6e8   :  { %2866 = vmatprep.subr.bf16.mxu0 %v3694_v4 }
 0x6e9   :  { %v1380_v21 = vpop.f32.mrb[30].mxu0 }
 0x6ea   :  { %v2830_v30 = vpack.c.bf16 %v1380_v21, %v1374_v28  ;;  %v1382_v25 = vpop.f32.mrb[31].mxu0  ;;  %2431 = vmatmul.mubr.msk.f32.vlgmr.msra.gmra.mrb[32].mxu0 %vm347_vm0, %v3288_v45  ;;  %v3699_v45 = vld [vmem:[#allocation18_spill] sm:$0xff] }
 0x6eb   :  { %2433 = vmatprep.mubr.msk.f32.mxu0 %vm347_vm0, %v3290_v46  ;;  %2868 = vmatpush3.bf16.msra.mxu0 %v3293_v51  ;;  %v3700_v46 = vld [vmem:[#allocation17_spill] sm:$0xff] }
 0x6ec   :  { %2831 = vmatprep.subr.bf16.mxu1 %v2830_v30  ;;  %2869 = vmatprep.subr.bf16.mxu0 %v3694_v4 }
 0x6ed   :  { %2833 = vmatpush3.bf16.msra.mxu1 %v2830_v30 }
 0x6ee   :  { %2434 = vmatmul.mubr.msk.f32.gmra.mrb[34].mxu0 %vm347_vm0, %v3301_v58  ;;  %2842 = vmatprep.subr.bf16.mxu1 %v3694_v4  ;;  %v3701_v58 = vld [vmem:[#allocation19_spill] sm:$0xff] }
 0x6ef   :  { %2871 = vmatpush3.bf16.msra.mxu0 %v3307_v62  ;;  %2503 = vmatprep.mubr.msk.f32.mxu0 %vm3060_vm1, %v3693_v36 }
 0x6f0   :  { %2417 = vmatmul.mubr.msk.f32.vlgmr.msra.gmra.mrb[28].mxu1 %vm347_vm0, %v3305_v61  ;;  %2872 = vmatprep.subr.bf16.mxu0 %v3694_v4  ;;  %v3703_v61 = vld [vmem:[#allocation21_spill] sm:$0xff] }
 0x6f1   :  { %2419 = vmatprep.mubr.msk.f32.mxu1 %vm347_vm0, %v3309_v1  ;;  %2844 = vmatpush3.bf16.msra.mxu1 %v3293_v51  ;;  %v3702_v51 = vld [vmem:[#allocation20_spill] sm:$0xff]  ;;  %v3705_v1 = vld [vmem:[#allocation23_spill] sm:$0xff] }
 0x6f2   :  { %2845 = vmatprep.subr.bf16.mxu1 %v3694_v4 }
 0x6f3   :  { %2874 = vmatpush3.bf16.msra.mxu0 %v3699_v45 }
 0x6f4   :  { %2420 = vmatmul.mubr.msk.f32.gmra.mrb[30].mxu1 %vm347_vm0, %v3700_v46  ;;  %2875 = vmatprep.subr.bf16.mxu0 %v3694_v4 }
 0x6f5   :  { %2847 = vmatpush3.bf16.msra.mxu1 %v3307_v62  ;;  %2468 = vmatprep.mubr.msk.f32.mxu1 %vm3060_vm1, %v3693_v36  ;;  %v3704_v62 = vld [vmem:[#allocation22_spill] sm:$0xff] }
 0x6f6   :  { %2848 = vmatprep.subr.bf16.mxu1 %v3694_v4 }
 0x6f7   :  { %2877 = vmatpush3.bf16.msra.mxu0 %v3701_v58 }
 0x6f8   :  { %2878 = vmatprep.subr.bf16.mxu0 %v3694_v4 }
 0x6f9   :  { %2850 = vmatpush3.bf16.msra.mxu1 %v3699_v45 }
 0x6fa   :  { %2851 = vmatprep.subr.bf16.mxu1 %v3694_v4 }
 0x6fb   :  { %2880 = vmatpush3.bf16.msra.mxu0 %v3702_v51 }
 0x6fc   :  { %2881 = vmatprep.subr.bf16.mxu0 %v3694_v4 }
 0x6fd   :  { %2853 = vmatpush3.bf16.msra.mxu1 %v3701_v58 }
 0x6fe   :  { %2854 = vmatprep.subr.bf16.mxu1 %v3694_v4 }
 0x6ff   :  { %2883 = vmatpush3.bf16.msra.mxu0 %v3703_v61 }
 0x700   :  { %2884 = vmatprep.subr.bf16.mxu0 %v3694_v4 }
 0x701   :  { %2856 = vmatpush3.bf16.msra.mxu1 %v3702_v51 }
 0x702   :  { %2857 = vmatprep.subr.bf16.mxu1 %v3694_v4 }
 0x703   :  { %2886 = vmatpush3.bf16.msra.mxu0 %v3704_v62 }
 0x704   :  { %2887 = vmatprep.subr.bf16.mxu0 %v3694_v4 }
 0x705   :  { %2859 = vmatpush3.bf16.msra.mxu1 %v3703_v61 }
 0x706   :  { %2860 = vmatprep.subr.bf16.mxu1 %v3694_v4 }
 0x707   :  { %2889 = vmatpush3.bf16.msra.mxu0 %v3705_v1 }
 0x709   :  { %2862 = vmatpush3.bf16.msra.mxu1 %v3704_v62 }
 0x70a   :  { %2863 = vmatprep.subr.bf16.mxu1 %v3694_v4 }
 0x70d   :  { %2865 = vmatpush3.bf16.msra.mxu1 %v3705_v1 }
 0x7bd   :  { %v2432_v36 = vpop.f32.mrb[32].mxu0 }
 0x7be   :  { %v1625_v23 = vpop.f32.mrb[33].mxu0 }
 0x7c1   :  { %v2435_v38 = vpop.f32.mrb[34].mxu0 }
 0x7c2   :  { %v1635_v29 = vpop.f32.mrb[35].mxu0 }
 0x7c3   :  { %v2418_v42 = vpop.f32.mrb[28].mxu1 }
 0x7c4   :  { %v1556_v33 = vadd.f32 %v2418_v42, %v1370_v52  ;;  %v1536_v56 = vpop.f32.mrb[29].mxu1 }
 0x7c5   :  { %v1555_v5 = vadd.f32 %v1536_v56, %v3583_v15 }
 0x7c6   :  { %v1645_v8 = vadd.f32 %v2432_v36, %v1556_v33 }
 0x7c7   :  { %v1644_v9 = vadd.f32 %v1625_v23, %v1555_v5  ;;  %v2421_v13 = vpop.f32.mrb[30].mxu1 }
 0x7c8   :  { %v1558_v17 = vadd.f32 %v2421_v13, %v1382_v25  ;;  %v1546_v18 = vpop.f32.mrb[31].mxu1  ;;  %v1658_v22 = vmul.f32 %v1645_v8, %v1645_v8 }
 0x7c9   :  { %v1657_v26 = vmul.f32 %v1644_v9, %v1644_v9  ;;  %v1557_v4 = vadd.f32 %v1546_v18, %v3585_v34  ;;  %v1648_v32 = vadd.f32 %v1645_v8, %v1644_v9 }
 0x7ca   :  { %v1647_v31 = vadd.f32 %v2435_v38, %v1558_v17 }
 0x7cb   :  { %v1646_v35 = vadd.f32 %v1635_v29, %v1557_v4  ;;  %v1661_v40 = vadd.f32 %v1658_v22, %v1657_v26 }
 0x7cc   :  { %v1660_v49 = vmul.f32 %v1647_v31, %v1647_v31 }
 0x7cd   :  { %v1649_v41 = vadd.f32 %v1648_v32, %v1646_v35  ;;  %v1659_v44 = vmul.f32 %v1646_v35, %v1646_v35 }
 0x7cf   :  { %v1650_v50 = vadd.f32 %v1649_v41, %v1647_v31  ;;  %v1662_v54 = vadd.f32 %v1661_v40, %v1659_v44 }
 0x7d1   :  { %v1651_v59 = vrot.slane %v1650_v50, 4  ;;  %v1663_v60 = vadd.f32 %v1662_v54, %v1660_v49 }
 0x7d3   :  { %v1652_v63 = vadd.f32 %v1651_v59, %v1650_v50  ;;  %v1664_v6 = vrot.slane %v1663_v60, 4 }
 0x7d5   :  { %v1653_v7 = vrot.slane %v1652_v63, 2  ;;  %v1665_v12 = vadd.f32 %v1664_v6, %v1663_v60 }
 0x7d7   :  { %v1654_v14 = vadd.f32 %v1653_v7, %v1652_v63  ;;  %v1666_v2 = vrot.slane %v1665_v12, 2 }
 0x7d9   :  { %v1655_v10 = vrot.slane %v1654_v14, 1  ;;  %v1667_v47 = vadd.f32 %v1666_v2, %v1665_v12 }
 0x7db   :  { %v1656_v37 = vadd.f32 %v1655_v10, %v1654_v14  ;;  %v1668_v27 = vrot.slane %v1667_v47, 1 }
 0x7dd   :  { %2469 = vmatmul.mubr.f32.vlgmr.msra.gmra.mrb[32].mxu1 %v1656_v37  ;;  %v1669_v24 = vadd.f32 %v1668_v27, %v1667_v47 }
 0x7df   :  { %2504 = vmatmul.mubr.f32.vlgmr.msra.gmra.mrb[36].mxu0 %v1669_v24 }
 0x8b0   :  { %v1736_v53 = vpop.f32.mrb[32].mxu1 }
 0x8b1   :  { %v1810_v15 = vmul.f32 %v1736_v53, %v1736_v53  ;;  %v2470_v16 = vpop.f32.mrb[33].mxu1 }
 0x8b2   :  { %v1806_v57 = vpop.f32.mrb[36].mxu0 }
 0x8b3   :  { %v1811_v19 = vsub.f32 %v1806_v57, %v1810_v15  ;;  %v2505_v48 = vpop.f32.mrb[37].mxu0 }
 0x8b5   :  { %v1812_v0 = vadd.f32 1e-05, %v1811_v19 }
 0x8b7   :  { %2907 = vrsqrt.f32 %v1812_v0 }
 0x8c1   :  { %v2908_v52 = vpop.eup %2907 }
 0x8c2   :  { %v1814_v11 = vmul.f32 %v2908_v52, %v3426_v39 }
 0x8c4   :  { %v1815_v55 = vmul.f32 %v1814_v11, %v1736_v53  ;;  %v1821_v20 = vrot.slane %v1814_v11, %v3428_v3 }
 0x8c6   :  { %v1816_v28 = vsub.f32 %v3434_v43, %v1815_v55  ;;  %v1823_v34 = vmul.f32 %v1821_v20, %v1644_v9  ;;  %v1824_v30 = vmul.f32 %v1821_v20, %v1645_v8  ;;  %v1825_v25 = vmul.f32 %v1821_v20, %v1646_v35 }
 0x8c7   :  { %v1826_v45 = vmul.f32 %v1821_v20, %v1647_v31 }
 0x8c8   :  { %v1831_v21 = vrot.slane %v1816_v28, %v3428_v3 }
 0x8ca   :  { %v1833_v46 = vadd.f32 %v1831_v21, %v1823_v34  ;;  %v1834_v58 = vadd.f32 %v1831_v21, %v1824_v30  ;;  %v1835_v51 = vadd.f32 %v1831_v21, %v1825_v25  ;;  %v1836_v61 = vadd.f32 %v1831_v21, %v1826_v45 }
 0x8cc   :  { %v1837_v62 = vmax.f32 %v1833_v46, 0.0  ;;  %v1838_v1 = vmax.f32 %v1834_v58, 0.0  ;;  %v1839_v39 = vmax.f32 %v1835_v51, 0.0  ;;  %v1840_v36 = vmax.f32 %v1836_v61, 0.0 }
 0x8ce   :  { %1841 = vst [vmem:[#allocation11] sm:$0xff] %v1837_v62  ;;  %1842 = vst [vmem:[#allocation11 + $0x8] sm:$0xff] %v1838_v1 }
 0x8cf   :  { %1843 = vst [vmem:[#allocation11 + $0x10] sm:$0xff] %v1839_v39  ;;  %1844 = vst [vmem:[#allocation11 + $0x18] sm:$0xff] %v1840_v36 }
 0x8d0   :  { %3030 = shalt.err (!%p3027_p2)
}
 0x8d1   :  { %s3031_s22 = scalar_lea.hbm %s3663_s7, 512 }
 0x8d2   :  { %p3032_p3 = scmp.ne.s32.totalorder %s3663_s7, %s3031_s22  ;;  %p3035_p4 = scmp.lt.u32.totalorder %s3031_s22, %s3663_s7 }
 0x8d4   :  { %p3037_p5 = pnand %p3035_p4, %p3032_p3 }
 0x8d6   :  { %3040 = shalt.err (!%p3037_p5)
}
 0x8d7   :  { %1856 = dma.vmem_to_hbm [thread:$0]  %s1851_s6, 512, %s3663_s7, [#allocation4], %s3054_s25, %s3054_s25, %s3055_s27  }
 0x8d8   :  { %3047 = dma.done.wait [#allocation4], 512  }
 0x8d9   :  { %3048 = vsyncadd [#allocation4], 4294966784 }
 0x8da   :  { %1860 = vsyncpa [#allocation3], 1 }
 0x8db   :  { %1861 = vsyncpa [#allocation6], 1 }
 0x8dc   :  { %1862 = vsyncpa [#allocation9], 1 }
 0x8dd   :  { %1863 = vsyncpa [#allocation4], 1 }

</bundles_post_ra>
